<compile_context>
chip_gen: v6e
topology: v6e:2x2x1
jax: 0.10.0
libtpu: 0.0.40
codegen_flags: <defaults>
</compile_context>

<pallas_src>
import math
import jax
import jax.numpy as jnp
from jax.experimental import pallas as pl
from jax.experimental.pallas import tpu as pltpu


# ---------------------------------------------------------------------------
# Pallas kernels
# ---------------------------------------------------------------------------

def conv_relu(cols, w, b):
    """Per-image conv-as-matmul with fused bias + ReLU, lane-dense output.

    cols: (N, K, P)   im2col patches, P = Ho*Wo (lane dim)
    w:    (Cout, K)   flattened conv weight
    b:    (Cout,)     bias
    returns (N, Cout, P)
    """
    N, K, P = cols.shape
    Cout = w.shape[0]

    def kernel(cols_ref, w_ref, b_ref, o_ref):
        # cols_ref: (K, P), w_ref: (Cout, K), b_ref: (Cout, 1), o_ref: (Cout, P)
        acc = jnp.dot(w_ref[...], cols_ref[...],
                      preferred_element_type=jnp.float32)       # (Cout, P)
        acc = acc + b_ref[...]                                   # lane broadcast
        o_ref[...] = jnp.maximum(acc, 0.0).astype(o_ref.dtype)

    flops = 2 * N * Cout * K * P
    bytes_accessed = 4 * (cols.size + w.size + Cout + N * Cout * P)

    return pl.pallas_call(
        kernel,
        out_shape=jax.ShapeDtypeStruct((N, Cout, P), cols.dtype),
        grid=(N,),
        in_specs=[
            pl.BlockSpec((None, K, P), lambda n: (n, 0, 0)),   # per-image block
            pl.BlockSpec((Cout, K), lambda n: (0, 0)),          # resident weight
            pl.BlockSpec((Cout, 1), lambda n: (0, 0)),          # resident bias
        ],
        out_specs=pl.BlockSpec((None, Cout, P), lambda n: (n, 0, 0)),
        compiler_params=pltpu.CompilerParams(
            dimension_semantics=("parallel",)),
        cost_estimate=pl.CostEstimate(
            flops=flops, transcendentals=0, bytes_accessed=bytes_accessed),
    )(cols, w, b.reshape(Cout, 1))


def max4(a, b, c, d):
    """Elementwise 4-way max (the 2x2 max-pool reduction). All inputs (R, C)."""
    R, C = a.shape

    def kernel(a_ref, b_ref, c_ref, d_ref, o_ref):
        o_ref[...] = jnp.maximum(
            jnp.maximum(a_ref[...], b_ref[...]),
            jnp.maximum(c_ref[...], d_ref[...]),
        )

    spec = pl.BlockSpec((R, C), lambda i: (0, 0))
    return pl.pallas_call(
        kernel,
        out_shape=jax.ShapeDtypeStruct((R, C), a.dtype),
        grid=(1,),
        in_specs=[spec, spec, spec, spec],
        out_specs=spec,
        compiler_params=pltpu.CompilerParams(
            dimension_semantics=("arbitrary",)),
        cost_estimate=pl.CostEstimate(
            flops=3 * R * C, transcendentals=0, bytes_accessed=4 * 5 * R * C),
    )(a, b, c, d)


def fc_stack(a, w1, b1, w2, b2, w3, b3):
    """Fused fc1+ReLU -> fc2+ReLU -> fc3 in a single pallas_call.

    a: (N, 400); w_i are already (in, out); b_i are (out,)."""
    N, D0 = a.shape
    D1 = w1.shape[1]
    D2 = w2.shape[1]
    D3 = w3.shape[1]

    def kernel(a_ref, w1_ref, b1_ref, w2_ref, b2_ref, w3_ref, b3_ref, o_ref):
        h = jnp.dot(a_ref[...], w1_ref[...], preferred_element_type=jnp.float32)
        h = jnp.maximum(h + b1_ref[...], 0.0)
        h = jnp.dot(h, w2_ref[...], preferred_element_type=jnp.float32)
        h = jnp.maximum(h + b2_ref[...], 0.0)
        o = jnp.dot(h, w3_ref[...], preferred_element_type=jnp.float32)
        o_ref[...] = (o + b3_ref[...]).astype(o_ref.dtype)

    def full_spec(shape):
        return pl.BlockSpec(shape, lambda i: (0,) * len(shape))

    flops = 2 * N * (D0 * D1 + D1 * D2 + D2 * D3)
    bytes_accessed = 4 * (a.size + w1.size + w2.size + w3.size
                          + D1 + D2 + D3 + N * D3)

    return pl.pallas_call(
        kernel,
        out_shape=jax.ShapeDtypeStruct((N, D3), a.dtype),
        grid=(1,),
        in_specs=[full_spec((N, D0)),
                  full_spec((D0, D1)), full_spec((1, D1)),
                  full_spec((D1, D2)), full_spec((1, D2)),
                  full_spec((D2, D3)), full_spec((1, D3))],
        out_specs=full_spec((N, D3)),
        compiler_params=pltpu.CompilerParams(
            dimension_semantics=("arbitrary",)),
        cost_estimate=pl.CostEstimate(
            flops=flops, transcendentals=0, bytes_accessed=bytes_accessed),
    )(a, w1, b1.reshape(1, D1), w2, b2.reshape(1, D2), w3, b3.reshape(1, D3))


# ---------------------------------------------------------------------------
# Plain-JAX layout glue (fused by XLA under jit)
# ---------------------------------------------------------------------------

def im2col(x, k):
    """x: (N, C, H, W) -> (N, C*k*k, Ho*Wo).  K ordering (ci, kh, kw) matches
    PyTorch Conv2d weight flattening; spatial goes to the last (lane) dim."""
    N, C, H, W = x.shape
    Ho, Wo = H - k + 1, W - k + 1
    patches = []
    for di in range(k):
        for dj in range(k):
            patches.append(x[:, :, di:di + Ho, dj:dj + Wo])   # (N,C,Ho,Wo)
    p = jnp.stack(patches, axis=2)                            # (N, C, k*k, Ho, Wo)
    return p.reshape(N, C * k * k, Ho * Wo)


def maxpool2x2(x):
    """x: (N, C, H, W) with even H, W -> (N, C, H//2, W//2).
    Window extraction is XLA glue; the reduction runs as a lane-dense Pallas
    kernel on (N*C, Ho*Wo) slabs."""
    N, C, H, W = x.shape
    Ho, Wo = H // 2, W // 2
    flat = lambda t: t.reshape(N * C, Ho * Wo)
    a = flat(x[:, :, 0::2, 0::2])
    b = flat(x[:, :, 0::2, 1::2])
    c = flat(x[:, :, 1::2, 0::2])
    d = flat(x[:, :, 1::2, 1::2])
    return max4(a, b, c, d).reshape(N, C, Ho, Wo)


# ---------------------------------------------------------------------------
# Parameters (deterministic, PyTorch-default-like uniform init)
# ---------------------------------------------------------------------------

def init_params(key):
    def uni(key, shape, fan_in):
        bound = 1.0 / math.sqrt(fan_in)
        return jax.random.uniform(key, shape, jnp.float32, -bound, bound)

    ks = jax.random.split(key, 10)
    return dict(
        conv1_w=uni(ks[0], (6, 3, 5, 5), 3 * 5 * 5),
        conv1_b=uni(ks[1], (6,), 3 * 5 * 5),
        conv2_w=uni(ks[2], (16, 6, 5, 5), 6 * 5 * 5),
        conv2_b=uni(ks[3], (16,), 6 * 5 * 5),
        fc1_w=uni(ks[4], (120, 400), 400),
        fc1_b=uni(ks[5], (120,), 400),
        fc2_w=uni(ks[6], (84, 120), 120),
        fc2_b=uni(ks[7], (84,), 120),
        fc3_w=uni(ks[8], (10, 84), 84),
        fc3_b=uni(ks[9], (10,), 84),
    )


# ---------------------------------------------------------------------------
# Forward pass (mirrors Net.forward)
# ---------------------------------------------------------------------------

def net_forward(x, p):
    N = x.shape[0]

    # conv1 (3->6, k=5) + ReLU, then 2x2 max pool
    cols = im2col(x, 5)                                    # (N, 75, 784)
    y = conv_relu(cols, p["conv1_w"].reshape(6, 75), p["conv1_b"])
    y = maxpool2x2(y.reshape(N, 6, 28, 28))                # (N, 6, 14, 14)

    # conv2 (6->16, k=5) + ReLU, then 2x2 max pool
    cols = im2col(y, 5)                                    # (N, 150, 100)
    y = conv_relu(cols, p["conv2_w"].reshape(16, 150), p["conv2_b"])
    y = maxpool2x2(y.reshape(N, 16, 10, 10))               # (N, 16, 5, 5)

    # flatten (matches torch x.view(-1, 16*5*5) on NCHW)
    y = y.reshape(N, 16 * 5 * 5)

    # fused fc1 -> relu -> fc2 -> relu -> fc3 (single pallas_call)
    # TODO(synk): could zero-pad the 120/84/10 dims to 128 for fully unmasked
    # MXU passes; negligible at these sizes.
    return fc_stack(y,
                    p["fc1_w"].T, p["fc1_b"],
                    p["fc2_w"].T, p["fc2_b"],
                    p["fc3_w"].T, p["fc3_b"])


# ---------------------------------------------------------------------------
# Pure-jnp reference (correctness sanity check)
# ---------------------------------------------------------------------------

def net_forward_ref(x, p):
    def conv(x, w, b):
        y = jax.lax.conv_general_dilated(
            x, w, window_strides=(1, 1), padding="VALID",
            dimension_numbers=("NCHW", "OIHW", "NCHW"))
        return y + b[None, :, None, None]

    def pool(x):
        return jax.lax.reduce_window(
            x, -jnp.inf, jax.lax.max,
            window_dimensions=(1, 1, 2, 2), window_strides=(1, 1, 2, 2),
            padding="VALID")

    y = pool(jax.nn.relu(conv(x, p["conv1_w"], p["conv1_b"])))
    y = pool(jax.nn.relu(conv(y, p["conv2_w"], p["conv2_b"])))
    y = y.reshape(x.shape[0], 16 * 5 * 5)
    y = jax.nn.relu(y @ p["fc1_w"].T + p["fc1_b"])
    y = jax.nn.relu(y @ p["fc2_w"].T + p["fc2_b"])
    return y @ p["fc3_w"].T + p["fc3_b"]


if __name__ == "__main__":
    key = jax.random.PRNGKey(0)
    k_x, k_p = jax.random.split(key)

    # batch=2, 3 channels, 32x32 spatial (the net's fc1 dim requires 32x32 input)
    x = jax.random.normal(k_x, (2, 3, 32, 32), dtype=jnp.float32)
    params = init_params(k_p)

    fwd = jax.jit(net_forward)
    out = jax.block_until_ready(fwd(x, params))
    assert out.shape == (2, 10)

    ref = jax.block_until_ready(net_forward_ref(x, params))
    assert jnp.allclose(out, ref, atol=1e-3, rtol=1e-3), "mismatch vs reference"

    print("KERNEL_OK")
</pallas_src>

<mosaic_0001>
module attributes {stable_mosaic.version = 11 : i64} {
  func.func @kernel(%arg0: i32, %arg1: memref<1x75x784xf32, #tpu.memory_space<vmem>>, %arg2: memref<6x75xf32, #tpu.memory_space<vmem>>, %arg3: memref<6x1xf32, #tpu.memory_space<vmem>>, %arg4: memref<1x6x784xf32, #tpu.memory_space<vmem>>) attributes {dimension_semantics = [#tpu.dimension_semantics<parallel>], iteration_bounds = array<i64: 2>, scalar_prefetch = 0 : i64, scratch_operands = 0 : i64, tpu.core_type = #tpu.core_type<tc>, window_params = [{transform_indices = @transform_0, window_bounds = array<i64: 1, 75, 784>}, {pipeline_mode = #tpu.pipeline_mode<synchronous>, transform_indices = @transform_1, window_bounds = array<i64: 6, 75>}, {pipeline_mode = #tpu.pipeline_mode<synchronous>, transform_indices = @transform_2, window_bounds = array<i64: 6, 1>}, {transform_indices = @transform_3, window_bounds = array<i64: 1, 6, 784>}]} {
    %c0 = arith.constant 0 : index
    %c0_0 = arith.constant 0 : index
    %0 = vector.load %arg2[%c0, %c0_0] : memref<6x75xf32, #tpu.memory_space<vmem>>, vector<6x75xf32>
    %c0_1 = arith.constant 0 : index
    %c0_2 = arith.constant 0 : index
    %c0_3 = arith.constant 0 : index
    %1 = vector.load %arg1[%c0_1, %c0_2, %c0_3] : memref<1x75x784xf32, #tpu.memory_space<vmem>>, vector<1x75x784xf32>
    %2 = vector.shape_cast %1 : vector<1x75x784xf32> to vector<75x784xf32>
    %cst = arith.constant dense<0.000000e+00> : vector<6x784xf32>
    %3 = tpu.matmul %0, %2, %cst {dimension_numbers = #tpu.dot_dimension_numbers<[1], [0], [0], [1], [0, 0, 1, 1], [], []>} : vector<6x75xf32>, vector<75x784xf32>, vector<6x784xf32> -> vector<6x784xf32>
    %c0_4 = arith.constant 0 : index
    %c0_5 = arith.constant 0 : index
    %4 = vector.load %arg3[%c0_4, %c0_5] : memref<6x1xf32, #tpu.memory_space<vmem>>, vector<6x1xf32>
    %5 = vector.broadcast %4 : vector<6x1xf32> to vector<6x784xf32>
    %6 = arith.addf %3, %5 : vector<6x784xf32>
    %cst_6 = arith.constant 0.000000e+00 : f32
    %7 = vector.broadcast %cst_6 : f32 to vector<6x784xf32>
    %8 = arith.maximumf %6, %7 : vector<6x784xf32>
    %c0_7 = arith.constant 0 : index
    %c0_8 = arith.constant 0 : index
    %c0_9 = arith.constant 0 : index
    %9 = vector.load %arg4[%c0_7, %c0_8, %c0_9] : memref<1x6x784xf32, #tpu.memory_space<vmem>>, vector<1x6x784xf32>
    %10 = vector.shape_cast %9 : vector<1x6x784xf32> to vector<6x784xf32>
    %11 = vector.shape_cast %8 : vector<6x784xf32> to vector<1x6x784xf32>
    tpu.vector_store %arg4[%c0_7, %c0_8, %c0_9], %11 {strides = array<i32>} : memref<1x6x784xf32, #tpu.memory_space<vmem>>, vector<1x6x784xf32>,
    return
  }
  func.func @transform_0(%arg0: i32) -> (i32, i32, i32) {
    %c0_i32 = arith.constant 0 : i32
    %c0_i32_0 = arith.constant 0 : i32
    %c0_i32_1 = arith.constant 0 : i32
    return %arg0, %c0_i32, %c0_i32_0 : i32, i32, i32
  }
  func.func @transform_1(%arg0: i32) -> (i32, i32) {
    %c0_i32 = arith.constant 0 : i32
    %c0_i32_0 = arith.constant 0 : i32
    %c0_i32_1 = arith.constant 0 : i32
    return %c0_i32, %c0_i32_0 : i32, i32
  }
  func.func @transform_2(%arg0: i32) -> (i32, i32) {
    %c0_i32 = arith.constant 0 : i32
    %c0_i32_0 = arith.constant 0 : i32
    %c0_i32_1 = arith.constant 0 : i32
    return %c0_i32, %c0_i32_0 : i32, i32
  }
  func.func @transform_3(%arg0: i32) -> (i32, i32, i32) {
    %c0_i32 = arith.constant 0 : i32
    %c0_i32_0 = arith.constant 0 : i32
    %c0_i32_1 = arith.constant 0 : i32
    return %arg0, %c0_i32, %c0_i32_0 : i32, i32, i32
  }
}

module attributes {stable_mosaic.version = 11 : i64} {
  func.func @kernel(%arg0: i32, %arg1: memref<12x196xf32, #tpu.memory_space<vmem>>, %arg2: memref<12x196xf32, #tpu.memory_space<vmem>>, %arg3: memref<12x196xf32, #tpu.memory_space<vmem>>, %arg4: memref<12x196xf32, #tpu.memory_space<vmem>>, %arg5: memref<12x196xf32, #tpu.memory_space<vmem>>) attributes {dimension_semantics = [#tpu.dimension_semantics<arbitrary>], iteration_bounds = array<i64: 1>, scalar_prefetch = 0 : i64, scratch_operands = 0 : i64, tpu.core_type = #tpu.core_type<tc>, window_params = [{pipeline_mode = #tpu.pipeline_mode<synchronous>, transform_indices = @transform_0, window_bounds = array<i64: 12, 196>}, {pipeline_mode = #tpu.pipeline_mode<synchronous>, transform_indices = @transform_1, window_bounds = array<i64: 12, 196>}, {pipeline_mode = #tpu.pipeline_mode<synchronous>, transform_indices = @transform_2, window_bounds = array<i64: 12, 196>}, {pipeline_mode = #tpu.pipeline_mode<synchronous>, transform_indices = @transform_3, window_bounds = array<i64: 12, 196>}, {pipeline_mode = #tpu.pipeline_mode<synchronous>, transform_indices = @transform_4, window_bounds = array<i64: 12, 196>}]} {
    %c0 = arith.constant 0 : index
    %c0_0 = arith.constant 0 : index
    %0 = vector.load %arg1[%c0, %c0_0] : memref<12x196xf32, #tpu.memory_space<vmem>>, vector<12x196xf32>
    %c0_1 = arith.constant 0 : index
    %c0_2 = arith.constant 0 : index
    %1 = vector.load %arg2[%c0_1, %c0_2] : memref<12x196xf32, #tpu.memory_space<vmem>>, vector<12x196xf32>
    %2 = arith.maximumf %0, %1 : vector<12x196xf32>
    %c0_3 = arith.constant 0 : index
    %c0_4 = arith.constant 0 : index
    %3 = vector.load %arg3[%c0_3, %c0_4] : memref<12x196xf32, #tpu.memory_space<vmem>>, vector<12x196xf32>
    %c0_5 = arith.constant 0 : index
    %c0_6 = arith.constant 0 : index
    %4 = vector.load %arg4[%c0_5, %c0_6] : memref<12x196xf32, #tpu.memory_space<vmem>>, vector<12x196xf32>
    %5 = arith.maximumf %3, %4 : vector<12x196xf32>
    %6 = arith.maximumf %2, %5 : vector<12x196xf32>
    %c0_7 = arith.constant 0 : index
    %c0_8 = arith.constant 0 : index
    %7 = vector.load %arg5[%c0_7, %c0_8] : memref<12x196xf32, #tpu.memory_space<vmem>>, vector<12x196xf32>
    tpu.vector_store %arg5[%c0_7, %c0_8], %6 {strides = array<i32>} : memref<12x196xf32, #tpu.memory_space<vmem>>, vector<12x196xf32>,
    return
  }
  func.func @transform_0(%arg0: i32) -> (i32, i32) {
    %c0_i32 = arith.constant 0 : i32
    %c0_i32_0 = arith.constant 0 : i32
    %c0_i32_1 = arith.constant 0 : i32
    return %c0_i32, %c0_i32_0 : i32, i32
  }
  func.func @transform_1(%arg0: i32) -> (i32, i32) {
    %c0_i32 = arith.constant 0 : i32
    %c0_i32_0 = arith.constant 0 : i32
    %c0_i32_1 = arith.constant 0 : i32
    return %c0_i32, %c0_i32_0 : i32, i32
  }
  func.func @transform_2(%arg0: i32) -> (i32, i32) {
    %c0_i32 = arith.constant 0 : i32
    %c0_i32_0 = arith.constant 0 : i32
    %c0_i32_1 = arith.constant 0 : i32
    return %c0_i32, %c0_i32_0 : i32, i32
  }
  func.func @transform_3(%arg0: i32) -> (i32, i32) {
    %c0_i32 = arith.constant 0 : i32
    %c0_i32_0 = arith.constant 0 : i32
    %c0_i32_1 = arith.constant 0 : i32
    return %c0_i32, %c0_i32_0 : i32, i32
  }
  func.func @transform_4(%arg0: i32) -> (i32, i32) {
    %c0_i32 = arith.constant 0 : i32
    %c0_i32_0 = arith.constant 0 : i32
    %c0_i32_1 = arith.constant 0 : i32
    return %c0_i32, %c0_i32_0 : i32, i32
  }
}

module attributes {stable_mosaic.version = 11 : i64} {
  func.func @kernel(%arg0: i32, %arg1: memref<1x150x100xf32, #tpu.memory_space<vmem>>, %arg2: memref<16x150xf32, #tpu.memory_space<vmem>>, %arg3: memref<16x1xf32, #tpu.memory_space<vmem>>, %arg4: memref<1x16x100xf32, #tpu.memory_space<vmem>>) attributes {dimension_semantics = [#tpu.dimension_semantics<parallel>], iteration_bounds = array<i64: 2>, scalar_prefetch = 0 : i64, scratch_operands = 0 : i64, tpu.core_type = #tpu.core_type<tc>, window_params = [{transform_indices = @transform_0, window_bounds = array<i64: 1, 150, 100>}, {pipeline_mode = #tpu.pipeline_mode<synchronous>, transform_indices = @transform_1, window_bounds = array<i64: 16, 150>}, {pipeline_mode = #tpu.pipeline_mode<synchronous>, transform_indices = @transform_2, window_bounds = array<i64: 16, 1>}, {transform_indices = @transform_3, window_bounds = array<i64: 1, 16, 100>}]} {
    %c0 = arith.constant 0 : index
    %c0_0 = arith.constant 0 : index
    %0 = vector.load %arg2[%c0, %c0_0] : memref<16x150xf32, #tpu.memory_space<vmem>>, vector<16x150xf32>
    %c0_1 = arith.constant 0 : index
    %c0_2 = arith.constant 0 : index
    %c0_3 = arith.constant 0 : index
    %1 = vector.load %arg1[%c0_1, %c0_2, %c0_3] : memref<1x150x100xf32, #tpu.memory_space<vmem>>, vector<1x150x100xf32>
    %2 = vector.shape_cast %1 : vector<1x150x100xf32> to vector<150x100xf32>
    %cst = arith.constant dense<0.000000e+00> : vector<16x100xf32>
    %3 = tpu.matmul %0, %2, %cst {dimension_numbers = #tpu.dot_dimension_numbers<[1], [0], [0], [1], [0, 0, 1, 1], [], []>} : vector<16x150xf32>, vector<150x100xf32>, vector<16x100xf32> -> vector<16x100xf32>
    %c0_4 = arith.constant 0 : index
    %c0_5 = arith.constant 0 : index
    %4 = vector.load %arg3[%c0_4, %c0_5] : memref<16x1xf32, #tpu.memory_space<vmem>>, vector<16x1xf32>
    %5 = vector.broadcast %4 : vector<16x1xf32> to vector<16x100xf32>
    %6 = arith.addf %3, %5 : vector<16x100xf32>
    %cst_6 = arith.constant 0.000000e+00 : f32
    %7 = vector.broadcast %cst_6 : f32 to vector<16x100xf32>
    %8 = arith.maximumf %6, %7 : vector<16x100xf32>
    %c0_7 = arith.constant 0 : index
    %c0_8 = arith.constant 0 : index
    %c0_9 = arith.constant 0 : index
    %9 = vector.load %arg4[%c0_7, %c0_8, %c0_9] : memref<1x16x100xf32, #tpu.memory_space<vmem>>, vector<1x16x100xf32>
    %10 = vector.shape_cast %9 : vector<1x16x100xf32> to vector<16x100xf32>
    %11 = vector.shape_cast %8 : vector<16x100xf32> to vector<1x16x100xf32>
    tpu.vector_store %arg4[%c0_7, %c0_8, %c0_9], %11 {strides = array<i32>} : memref<1x16x100xf32, #tpu.memory_space<vmem>>, vector<1x16x100xf32>,
    return
  }
  func.func @transform_0(%arg0: i32) -> (i32, i32, i32) {
    %c0_i32 = arith.constant 0 : i32
    %c0_i32_0 = arith.constant 0 : i32
    %c0_i32_1 = arith.constant 0 : i32
    return %arg0, %c0_i32, %c0_i32_0 : i32, i32, i32
  }
  func.func @transform_1(%arg0: i32) -> (i32, i32) {
    %c0_i32 = arith.constant 0 : i32
    %c0_i32_0 = arith.constant 0 : i32
    %c0_i32_1 = arith.constant 0 : i32
    return %c0_i32, %c0_i32_0 : i32, i32
  }
  func.func @transform_2(%arg0: i32) -> (i32, i32) {
    %c0_i32 = arith.constant 0 : i32
    %c0_i32_0 = arith.constant 0 : i32
    %c0_i32_1 = arith.constant 0 : i32
    return %c0_i32, %c0_i32_0 : i32, i32
  }
  func.func @transform_3(%arg0: i32) -> (i32, i32, i32) {
    %c0_i32 = arith.constant 0 : i32
    %c0_i32_0 = arith.constant 0 : i32
    %c0_i32_1 = arith.constant 0 : i32
    return %arg0, %c0_i32, %c0_i32_0 : i32, i32, i32
  }
}

module attributes {stable_mosaic.version = 11 : i64} {
  func.func @kernel(%arg0: i32, %arg1: memref<32x25xf32, #tpu.memory_space<vmem>>, %arg2: memref<32x25xf32, #tpu.memory_space<vmem>>, %arg3: memref<32x25xf32, #tpu.memory_space<vmem>>, %arg4: memref<32x25xf32, #tpu.memory_space<vmem>>, %arg5: memref<32x25xf32, #tpu.memory_space<vmem>>) attributes {dimension_semantics = [#tpu.dimension_semantics<arbitrary>], iteration_bounds = array<i64: 1>, scalar_prefetch = 0 : i64, scratch_operands = 0 : i64, tpu.core_type = #tpu.core_type<tc>, window_params = [{pipeline_mode = #tpu.pipeline_mode<synchronous>, transform_indices = @transform_0, window_bounds = array<i64: 32, 25>}, {pipeline_mode = #tpu.pipeline_mode<synchronous>, transform_indices = @transform_1, window_bounds = array<i64: 32, 25>}, {pipeline_mode = #tpu.pipeline_mode<synchronous>, transform_indices = @transform_2, window_bounds = array<i64: 32, 25>}, {pipeline_mode = #tpu.pipeline_mode<synchronous>, transform_indices = @transform_3, window_bounds = array<i64: 32, 25>}, {pipeline_mode = #tpu.pipeline_mode<synchronous>, transform_indices = @transform_4, window_bounds = array<i64: 32, 25>}]} {
    %c0 = arith.constant 0 : index
    %c0_0 = arith.constant 0 : index
    %0 = vector.load %arg1[%c0, %c0_0] : memref<32x25xf32, #tpu.memory_space<vmem>>, vector<32x25xf32>
    %c0_1 = arith.constant 0 : index
    %c0_2 = arith.constant 0 : index
    %1 = vector.load %arg2[%c0_1, %c0_2] : memref<32x25xf32, #tpu.memory_space<vmem>>, vector<32x25xf32>
    %2 = arith.maximumf %0, %1 : vector<32x25xf32>
    %c0_3 = arith.constant 0 : index
    %c0_4 = arith.constant 0 : index
    %3 = vector.load %arg3[%c0_3, %c0_4] : memref<32x25xf32, #tpu.memory_space<vmem>>, vector<32x25xf32>
    %c0_5 = arith.constant 0 : index
    %c0_6 = arith.constant 0 : index
    %4 = vector.load %arg4[%c0_5, %c0_6] : memref<32x25xf32, #tpu.memory_space<vmem>>, vector<32x25xf32>
    %5 = arith.maximumf %3, %4 : vector<32x25xf32>
    %6 = arith.maximumf %2, %5 : vector<32x25xf32>
    %c0_7 = arith.constant 0 : index
    %c0_8 = arith.constant 0 : index
    %7 = vector.load %arg5[%c0_7, %c0_8] : memref<32x25xf32, #tpu.memory_space<vmem>>, vector<32x25xf32>
    tpu.vector_store %arg5[%c0_7, %c0_8], %6 {strides = array<i32>} : memref<32x25xf32, #tpu.memory_space<vmem>>, vector<32x25xf32>,
    return
  }
  func.func @transform_0(%arg0: i32) -> (i32, i32) {
    %c0_i32 = arith.constant 0 : i32
    %c0_i32_0 = arith.constant 0 : i32
    %c0_i32_1 = arith.constant 0 : i32
    return %c0_i32, %c0_i32_0 : i32, i32
  }
  func.func @transform_1(%arg0: i32) -> (i32, i32) {
    %c0_i32 = arith.constant 0 : i32
    %c0_i32_0 = arith.constant 0 : i32
    %c0_i32_1 = arith.constant 0 : i32
    return %c0_i32, %c0_i32_0 : i32, i32
  }
  func.func @transform_2(%arg0: i32) -> (i32, i32) {
    %c0_i32 = arith.constant 0 : i32
    %c0_i32_0 = arith.constant 0 : i32
    %c0_i32_1 = arith.constant 0 : i32
    return %c0_i32, %c0_i32_0 : i32, i32
  }
  func.func @transform_3(%arg0: i32) -> (i32, i32) {
    %c0_i32 = arith.constant 0 : i32
    %c0_i32_0 = arith.constant 0 : i32
    %c0_i32_1 = arith.constant 0 : i32
    return %c0_i32, %c0_i32_0 : i32, i32
  }
  func.func @transform_4(%arg0: i32) -> (i32, i32) {
    %c0_i32 = arith.constant 0 : i32
    %c0_i32_0 = arith.constant 0 : i32
    %c0_i32_1 = arith.constant 0 : i32
    return %c0_i32, %c0_i32_0 : i32, i32
  }
}

module attributes {stable_mosaic.version = 11 : i64} {
  func.func @kernel(%arg0: i32, %arg1: memref<2x400xf32, #tpu.memory_space<vmem>>, %arg2: memref<400x120xf32, #tpu.memory_space<vmem>>, %arg3: memref<1x120xf32, #tpu.memory_space<vmem>>, %arg4: memref<120x84xf32, #tpu.memory_space<vmem>>, %arg5: memref<1x84xf32, #tpu.memory_space<vmem>>, %arg6: memref<84x10xf32, #tpu.memory_space<vmem>>, %arg7: memref<1x10xf32, #tpu.memory_space<vmem>>, %arg8: memref<2x10xf32, #tpu.memory_space<vmem>>) attributes {dimension_semantics = [#tpu.dimension_semantics<arbitrary>], iteration_bounds = array<i64: 1>, scalar_prefetch = 0 : i64, scratch_operands = 0 : i64, tpu.core_type = #tpu.core_type<tc>, window_params = [{pipeline_mode = #tpu.pipeline_mode<synchronous>, transform_indices = @transform_0, window_bounds = array<i64: 2, 400>}, {pipeline_mode = #tpu.pipeline_mode<synchronous>, transform_indices = @transform_1, window_bounds = array<i64: 400, 120>}, {pipeline_mode = #tpu.pipeline_mode<synchronous>, transform_indices = @transform_2, window_bounds = array<i64: 1, 120>}, {pipeline_mode = #tpu.pipeline_mode<synchronous>, transform_indices = @transform_3, window_bounds = array<i64: 120, 84>}, {pipeline_mode = #tpu.pipeline_mode<synchronous>, transform_indices = @transform_4, window_bounds = array<i64: 1, 84>}, {pipeline_mode = #tpu.pipeline_mode<synchronous>, transform_indices = @transform_5, window_bounds = array<i64: 84, 10>}, {pipeline_mode = #tpu.pipeline_mode<synchronous>, transform_indices = @transform_6, window_bounds = array<i64: 1, 10>}, {pipeline_mode = #tpu.pipeline_mode<synchronous>, transform_indices = @transform_7, window_bounds = array<i64: 2, 10>}]} {
    %c0 = arith.constant 0 : index
    %c0_0 = arith.constant 0 : index
    %0 = vector.load %arg1[%c0, %c0_0] : memref<2x400xf32, #tpu.memory_space<vmem>>, vector<2x400xf32>
    %c0_1 = arith.constant 0 : index
    %c0_2 = arith.constant 0 : index
    %1 = vector.load %arg2[%c0_1, %c0_2] : memref<400x120xf32, #tpu.memory_space<vmem>>, vector<400x120xf32>
    %cst = arith.constant dense<0.000000e+00> : vector<2x120xf32>
    %2 = tpu.matmul %0, %1, %cst {dimension_numbers = #tpu.dot_dimension_numbers<[1], [0], [0], [1], [0, 0, 1, 1], [], []>} : vector<2x400xf32>, vector<400x120xf32>, vector<2x120xf32> -> vector<2x120xf32>
    %c0_3 = arith.constant 0 : index
    %c0_4 = arith.constant 0 : index
    %3 = vector.load %arg3[%c0_3, %c0_4] : memref<1x120xf32, #tpu.memory_space<vmem>>, vector<1x120xf32>
    %4 = vector.broadcast %3 : vector<1x120xf32> to vector<2x120xf32>
    %5 = arith.addf %2, %4 : vector<2x120xf32>
    %cst_5 = arith.constant 0.000000e+00 : f32
    %6 = vector.broadcast %cst_5 : f32 to vector<2x120xf32>
    %7 = arith.maximumf %5, %6 : vector<2x120xf32>
    %c0_6 = arith.constant 0 : index
    %c0_7 = arith.constant 0 : index
    %8 = vector.load %arg4[%c0_6, %c0_7] : memref<120x84xf32, #tpu.memory_space<vmem>>, vector<120x84xf32>
    %cst_8 = arith.constant dense<0.000000e+00> : vector<2x84xf32>
    %9 = tpu.matmul %7, %8, %cst_8 {dimension_numbers = #tpu.dot_dimension_numbers<[1], [0], [0], [1], [0, 0, 1, 1], [], []>} : vector<2x120xf32>, vector<120x84xf32>, vector<2x84xf32> -> vector<2x84xf32>
    %c0_9 = arith.constant 0 : index
    %c0_10 = arith.constant 0 : index
    %10 = vector.load %arg5[%c0_9, %c0_10] : memref<1x84xf32, #tpu.memory_space<vmem>>, vector<1x84xf32>
    %11 = vector.broadcast %10 : vector<1x84xf32> to vector<2x84xf32>
    %12 = arith.addf %9, %11 : vector<2x84xf32>
    %cst_11 = arith.constant 0.000000e+00 : f32
    %13 = vector.broadcast %cst_11 : f32 to vector<2x84xf32>
    %14 = arith.maximumf %12, %13 : vector<2x84xf32>
    %c0_12 = arith.constant 0 : index
    %c0_13 = arith.constant 0 : index
    %15 = vector.load %arg6[%c0_12, %c0_13] : memref<84x10xf32, #tpu.memory_space<vmem>>, vector<84x10xf32>
    %cst_14 = arith.constant dense<0.000000e+00> : vector<2x10xf32>
    %16 = tpu.matmul %14, %15, %cst_14 {dimension_numbers = #tpu.dot_dimension_numbers<[1], [0], [0], [1], [0, 0, 1, 1], [], []>} : vector<2x84xf32>, vector<84x10xf32>, vector<2x10xf32> -> vector<2x10xf32>
    %c0_15 = arith.constant 0 : index
    %c0_16 = arith.constant 0 : index
    %17 = vector.load %arg7[%c0_15, %c0_16] : memref<1x10xf32, #tpu.memory_space<vmem>>, vector<1x10xf32>
    %18 = vector.broadcast %17 : vector<1x10xf32> to vector<2x10xf32>
    %19 = arith.addf %16, %18 : vector<2x10xf32>
    %c0_17 = arith.constant 0 : index
    %c0_18 = arith.constant 0 : index
    %20 = vector.load %arg8[%c0_17, %c0_18] : memref<2x10xf32, #tpu.memory_space<vmem>>, vector<2x10xf32>
    tpu.vector_store %arg8[%c0_17, %c0_18], %19 {strides = array<i32>} : memref<2x10xf32, #tpu.memory_space<vmem>>, vector<2x10xf32>,
    return
  }
  func.func @transform_0(%arg0: i32) -> (i32, i32) {
    %c0_i32 = arith.constant 0 : i32
    %c0_i32_0 = arith.constant 0 : i32
    %c0_i32_1 = arith.constant 0 : i32
    return %c0_i32, %c0_i32_0 : i32, i32
  }
  func.func @transform_1(%arg0: i32) -> (i32, i32) {
    %c0_i32 = arith.constant 0 : i32
    %c0_i32_0 = arith.constant 0 : i32
    %c0_i32_1 = arith.constant 0 : i32
    return %c0_i32, %c0_i32_0 : i32, i32
  }
  func.func @transform_2(%arg0: i32) -> (i32, i32) {
    %c0_i32 = arith.constant 0 : i32
    %c0_i32_0 = arith.constant 0 : i32
    %c0_i32_1 = arith.constant 0 : i32
    return %c0_i32, %c0_i32_0 : i32, i32
  }
  func.func @transform_3(%arg0: i32) -> (i32, i32) {
    %c0_i32 = arith.constant 0 : i32
    %c0_i32_0 = arith.constant 0 : i32
    %c0_i32_1 = arith.constant 0 : i32
    return %c0_i32, %c0_i32_0 : i32, i32
  }
  func.func @transform_4(%arg0: i32) -> (i32, i32) {
    %c0_i32 = arith.constant 0 : i32
    %c0_i32_0 = arith.constant 0 : i32
    %c0_i32_1 = arith.constant 0 : i32
    return %c0_i32, %c0_i32_0 : i32, i32
  }
  func.func @transform_5(%arg0: i32) -> (i32, i32) {
    %c0_i32 = arith.constant 0 : i32
    %c0_i32_0 = arith.constant 0 : i32
    %c0_i32_1 = arith.constant 0 : i32
    return %c0_i32, %c0_i32_0 : i32, i32
  }
  func.func @transform_6(%arg0: i32) -> (i32, i32) {
    %c0_i32 = arith.constant 0 : i32
    %c0_i32_0 = arith.constant 0 : i32
    %c0_i32_1 = arith.constant 0 : i32
    return %c0_i32, %c0_i32_0 : i32, i32
  }
  func.func @transform_7(%arg0: i32) -> (i32, i32) {
    %c0_i32 = arith.constant 0 : i32
    %c0_i32_0 = arith.constant 0 : i32
    %c0_i32_1 = arith.constant 0 : i32
    return %c0_i32, %c0_i32_0 : i32, i32
  }
}

</mosaic_0001>

<bundles_post_ra>
// kernel: net_forward.5
= control target key start
LH: loop header
LB: loop body
LE: loop exit
PB: predicated region body
PF: predicated region fallthrough
CT: control target
= control target key end

     0   :  { %s726_s12 = smov 0   ;;  %s856_s0 = inlined_call_operand.vmem [shape: f32[2,75,784], index: 0, kind: input, shape index: {}]   ;;  %s857_s1 = inlined_call_operand.vmem [shape: f32[6,75], index: 1, kind: input, shape index: {}]   ;;  %s858_s2 = inlined_call_operand.vmem [shape: f32[6,1], index: 2, kind: input, shape index: {}]   ;;  %s859_s3 = inlined_call_operand.vmem [shape: f32[2,6,784], index: 3, kind: output, shape index: {}]  }
   0x1 LB: > { %s627_s13 = sadd.s32 4294967295, %s701_s12   ;;  %p631_p0 = scmp.ge.s32.totalorder %s701_s12, 1  ;;  %s701_s12 = sphi %s726_s12, %s13_s12  }
   0x2   : > { %p137_p1 = scmp.lt.s32.totalorder %s701_s12, 3 }
   0x4   : > { %p138_p2 = pnand %p631_p0, %p137_p1 }
   0x5   : > { %p161_p3 = scmp.lt.s32.totalorder (!%p138_p2), %s627_s13, 1 }
   0x6   : > { %141 = sbr.rel (%p138_p2) target bundleno = 258 (0x102), region = 32 }
   0xb   : > { %v703_v0 = vmov 0.0   ;;  %v242_v1 = vld [vmem:[%s858_s2] sm:$0x3f]  ;;  %s861_s13 = smov (!%p161_p3, %s627_s13), 1  ;;  %v704_v2 = vmov 0   ;;  %vm252_vm0 = vcmask 1042432  }
   0xc   : > { %338 = vmatprep.mubr.f32.mxu0 %v703_v0  ;;  %409 = vmatprep.mubr.f32.mxu1 %v703_v0  ;;  %s681_s16 = smul.u32 560, %s861_s13  ;;  %v794_v43 = vld [vmem:[%s857_s1] sm:$0x3f]  ;;  %vm248_vm1 = vcmask 613376   ;;  %vm705_vm2 = vmmov 0   ;;  %vm570_vm3 = vcmask 128000  }
   0xd   : > { %694 = vset.pattern.permute.xlu0 %v704_v2  ;;  %s682_s22 = smul.u32 56, %s861_s13 }
   0xe   : > { %245 = vperm.xlu0 %694, %v242_v1   ;;  %s745_s19 = scalar_lea.vmem %s856_s0, %s681_s16 }
   0xf   : > { %v236_v3 = vld [vmem:[%s745_s19 + $0x200] sm:$0x7]  ;;  %v238_v4 = vld [vmem:[%s745_s19 + $0x210] sm:$0x7]  ;;  %v235_v5 = vld [vmem:[%s745_s19 + $0x1f8] sm:$0x7]  ;;  %s170_s25 = scalar_lea.vmem %s859_s3, %s682_s22 }
  0x10   : > { %634 = vmatprep.subr.msk.mxu0 %vm252_vm0, %v236_v3  ;;  %637 = vmatprep.subr.msk.mxu1 %vm252_vm0, %v238_v4  ;;  %v237_v6 = vld [vmem:[%s745_s19 + $0x208] sm:$0x7]  ;;  %v231_v8 = vld [vmem:[%s745_s19 + $0x1d8] sm:$0xff]  ;;  %v228_v9 = vld [vmem:[%s745_s19 + $0x1c0] sm:$0xff] }
  0x11   : > { %v229_v7 = vld [vmem:[%s745_s19 + $0x1c8] sm:$0xff]  ;;  %635 = vmatpush1.msk.msra.mxu0 %vm252_vm0, %v235_v5  ;;  %638 = vmatpush1.msk.msra.mxu1 %vm252_vm0, %v237_v6  ;;  %v230_v10 = vld [vmem:[%s745_s19 + $0x1d0] sm:$0xff]  ;;  %v224_v12 = vld [vmem:[%s745_s19 + $0x1a0] sm:$0xff] }
  0x12   : > { %v222_v11 = vld [vmem:[%s745_s19 + $0x190] sm:$0xff]  ;;  %288 = vmatprep.subr.mxu0 %v229_v7  ;;  %359 = vmatprep.subr.mxu1 %v231_v8  ;;  %v221_v13 = vld [vmem:[%s745_s19 + $0x188] sm:$0xff]  ;;  %v223_v14 = vld [vmem:[%s745_s19 + $0x198] sm:$0xff] }
  0x13   : > { %289 = vmatpush1.msra.mxu0 %v228_v9  ;;  %360 = vmatpush1.msra.mxu1 %v230_v10  ;;  %v215_v15 = vld [vmem:[%s745_s19 + $0x158] sm:$0xff]  ;;  %v217_v16 = vld [vmem:[%s745_s19 + $0x168] sm:$0xff]  ;;  %v214_v17 = vld [vmem:[%s745_s19 + $0x150] sm:$0xff] }
  0x14   : > { %290 = vmatprep.subr.mxu0 %v222_v11  ;;  %361 = vmatprep.subr.mxu1 %v224_v12  ;;  %v216_v18 = vld [vmem:[%s745_s19 + $0x160] sm:$0xff]  ;;  %v210_v20 = vld [vmem:[%s745_s19 + $0x130] sm:$0xff]  ;;  %v207_v21 = vld [vmem:[%s745_s19 + $0x118] sm:$0xff] }
  0x15   : > { %291 = vmatpush1.msra.mxu0 %v221_v13  ;;  %362 = vmatpush1.msra.mxu1 %v223_v14  ;;  %v208_v19 = vld [vmem:[%s745_s19 + $0x120] sm:$0xff]  ;;  %v209_v22 = vld [vmem:[%s745_s19 + $0x128] sm:$0xff]  ;;  %v203_v24 = vld [vmem:[%s745_s19 + $0xf8] sm:$0xff] }
  0x16   : > { %292 = vmatprep.subr.mxu0 %v215_v15  ;;  %363 = vmatprep.subr.mxu1 %v217_v16  ;;  %v201_v23 = vld [vmem:[%s745_s19 + $0xe8] sm:$0xff]  ;;  %v200_v25 = vld [vmem:[%s745_s19 + $0xe0] sm:$0xff]  ;;  %v202_v26 = vld [vmem:[%s745_s19 + $0xf0] sm:$0xff] }
  0x17   : > { %293 = vmatpush1.msra.mxu0 %v214_v17  ;;  %364 = vmatpush1.msra.mxu1 %v216_v18  ;;  %v194_v27 = vld [vmem:[%s745_s19 + $0xb0] sm:$0xff]  ;;  %v196_v28 = vld [vmem:[%s745_s19 + $0xc0] sm:$0xff]  ;;  %v193_v29 = vld [vmem:[%s745_s19 + $0xa8] sm:$0xff] }
  0x18   : > { %294 = vmatprep.subr.mxu0 %v208_v19  ;;  %365 = vmatprep.subr.mxu1 %v210_v20  ;;  %v195_v30 = vld [vmem:[%s745_s19 + $0xb8] sm:$0xff]  ;;  %v189_v32 = vld [vmem:[%s745_s19 + $0x88] sm:$0xff]  ;;  %v186_v33 = vld [vmem:[%s745_s19 + $0x70] sm:$0xff] }
  0x19   : > { %295 = vmatpush1.msra.mxu0 %v207_v21  ;;  %366 = vmatpush1.msra.mxu1 %v209_v22  ;;  %v187_v31 = vld [vmem:[%s745_s19 + $0x78] sm:$0xff]  ;;  %v188_v34 = vld [vmem:[%s745_s19 + $0x80] sm:$0xff]  ;;  %v182_v36 = vld [vmem:[%s745_s19 + $0x50] sm:$0xff] }
  0x1a   : > { %296 = vmatprep.subr.mxu0 %v201_v23  ;;  %367 = vmatprep.subr.mxu1 %v203_v24  ;;  %v180_v35 = vld [vmem:[%s745_s19 + $0x40] sm:$0xff]  ;;  %v179_v37 = vld [vmem:[%s745_s19 + $0x38] sm:$0xff]  ;;  %v181_v38 = vld [vmem:[%s745_s19 + $0x48] sm:$0xff] }
  0x1b   : > { %297 = vmatpush1.msra.mxu0 %v200_v25  ;;  %368 = vmatpush1.msra.mxu1 %v202_v26  ;;  %v173_v39 = vld [vmem:[%s745_s19 + $0x8] sm:$0xff]  ;;  %v175_v40 = vld [vmem:[%s745_s19 + $0x18] sm:$0xff]  ;;  %v172_v41 = vld [vmem:[%s745_s19] sm:$0xff] }
  0x1c   : > { %298 = vmatprep.subr.mxu0 %v194_v27  ;;  %369 = vmatprep.subr.mxu1 %v196_v28  ;;  %v174_v42 = vld [vmem:[%s745_s19 + $0x10] sm:$0xff]  ;;  %v240_v44 = vld [vmem:[%s745_s19 + $0x220] sm:$0x7]  ;;  %v239_v45 = vld [vmem:[%s745_s19 + $0x218] sm:$0x7] }
  0x1d   : > { %299 = vmatpush1.msra.mxu0 %v193_v29  ;;  %370 = vmatpush1.msra.mxu1 %v195_v30  ;;  %v241_v46 = vld [vmem:[%s745_s19 + $0x228] sm:$0x7]  ;;  %v232_v48 = vld [vmem:[%s745_s19 + $0x1e0] sm:$0xff]  ;;  %v234_v49 = vld [vmem:[%s745_s19 + $0x1f0] sm:$0xff] }
  0x1e   : > { %300 = vmatprep.subr.mxu0 %v187_v31  ;;  %371 = vmatprep.subr.mxu1 %v189_v32  ;;  %v233_v47 = vld [vmem:[%s745_s19 + $0x1e8] sm:$0xff]  ;;  %v226_v50 = vld [vmem:[%s745_s19 + $0x1b0] sm:$0xff]  ;;  %v227_v52 = vld [vmem:[%s745_s19 + $0x1b8] sm:$0xff] }
  0x1f   : > { %301 = vmatpush1.msra.mxu0 %v186_v33  ;;  %372 = vmatpush1.msra.mxu1 %v188_v34  ;;  %v225_v51 = vld [vmem:[%s745_s19 + $0x1a8] sm:$0xff]  ;;  %v219_v53 = vld [vmem:[%s745_s19 + $0x178] sm:$0xff]  ;;  %v218_v54 = vld [vmem:[%s745_s19 + $0x170] sm:$0xff] }
  0x20   : > { %302 = vmatprep.subr.mxu0 %v180_v35  ;;  %373 = vmatprep.subr.mxu1 %v182_v36  ;;  %v220_v55 = vld [vmem:[%s745_s19 + $0x180] sm:$0xff]  ;;  %v211_v57 = vld [vmem:[%s745_s19 + $0x138] sm:$0xff]  ;;  %v213_v58 = vld [vmem:[%s745_s19 + $0x148] sm:$0xff] }
  0x21   : > { %303 = vmatpush1.msra.mxu0 %v179_v37  ;;  %374 = vmatpush1.msra.mxu1 %v181_v38  ;;  %v212_v56 = vld [vmem:[%s745_s19 + $0x140] sm:$0xff]  ;;  %v205_v59 = vld [vmem:[%s745_s19 + $0x108] sm:$0xff]  ;;  %v206_v61 = vld [vmem:[%s745_s19 + $0x110] sm:$0xff] }
  0x22   : > { %304 = vmatprep.subr.mxu0 %v173_v39  ;;  %375 = vmatprep.subr.mxu1 %v175_v40  ;;  %v204_v60 = vld [vmem:[%s745_s19 + $0x100] sm:$0xff]  ;;  %v198_v62 = vld [vmem:[%s745_s19 + $0xd0] sm:$0xff]  ;;  %v197_v63 = vld [vmem:[%s745_s19 + $0xc8] sm:$0xff] }
  0x23   : > { %305 = vmatpush1.msra.mxu0 %v172_v41  ;;  %376 = vmatpush1.msra.mxu1 %v174_v42  ;;  %v199_v1 = vld [vmem:[%s745_s19 + $0xd8] sm:$0xff]  ;;  %v190_v3 = vld [vmem:[%s745_s19 + $0x90] sm:$0xff]  ;;  %v192_v4 = vld [vmem:[%s745_s19 + $0xa0] sm:$0xff] }
  0x24   : > { %636 = vmatmul.mubr.msk.f32.vlgmr.msra.gmra.mxu0 %vm248_vm1, %v794_v43  ;;  %640 = vmatprep.subr.msk.mxu0 %vm252_vm0, %v240_v44  ;;  %v191_v2 = vld [vmem:[%s745_s19 + $0x98] sm:$0xff]  ;;  %v184_v5 = vld [vmem:[%s745_s19 + $0x60] sm:$0xff]  ;;  %v185_v7 = vld [vmem:[%s745_s19 + $0x68] sm:$0xff] }
  0x25   : > { %658 = vmatprep.subr.mxu1 %v703_v0  ;;  %639 = vmatmul.mubr.msk.f32.vlgmr.msra.gmra.mxu1 %vm248_vm1, %v794_v43  ;;  %v183_v6 = vld [vmem:[%s745_s19 + $0x58] sm:$0xff]  ;;  %v177_v8 = vld [vmem:[%s745_s19 + $0x28] sm:$0xff]  ;;  %v176_v9 = vld [vmem:[%s745_s19 + $0x20] sm:$0xff] }
  0x26   : > { %641 = vmatpush1.msk.msra.mxu0 %vm252_vm0, %v239_v45  ;;  %659 = vmatpush3.msk.msra.mxu1 %vm252_vm0, %v241_v46  ;;  %v178_v10 = vld [vmem:[%s745_s19 + $0x30] sm:$0xff] }
  0x27   : > { %430 = vmatprep.subr.mxu0 %v233_v47  ;;  %660 = vmatprep.subr.mxu1 %v703_v0 }
  0x28   : > { %431 = vmatpush1.msra.mxu0 %v232_v48  ;;  %661 = vmatpush3.msra.mxu1 %v234_v49 }
  0x29   : > { %432 = vmatprep.subr.mxu0 %v226_v50  ;;  %662 = vmatprep.subr.mxu1 %v703_v0 }
  0x2a   : > { %433 = vmatpush1.msra.mxu0 %v225_v51  ;;  %663 = vmatpush3.msra.mxu1 %v227_v52 }
  0x2b   : > { %434 = vmatprep.subr.mxu0 %v219_v53  ;;  %664 = vmatprep.subr.mxu1 %v703_v0 }
  0x2c   : > { %435 = vmatpush1.msra.mxu0 %v218_v54  ;;  %665 = vmatpush3.msra.mxu1 %v220_v55 }
  0x2d   : > { %436 = vmatprep.subr.mxu0 %v212_v56  ;;  %666 = vmatprep.subr.mxu1 %v703_v0 }
  0x2e   : > { %437 = vmatpush1.msra.mxu0 %v211_v57  ;;  %667 = vmatpush3.msra.mxu1 %v213_v58 }
  0x2f   : > { %438 = vmatprep.subr.mxu0 %v205_v59  ;;  %668 = vmatprep.subr.mxu1 %v703_v0 }
  0x30   : > { %439 = vmatpush1.msra.mxu0 %v204_v60  ;;  %669 = vmatpush3.msra.mxu1 %v206_v61 }
  0x31   : > { %440 = vmatprep.subr.mxu0 %v198_v62  ;;  %670 = vmatprep.subr.mxu1 %v703_v0 }
  0x32   : > { %441 = vmatpush1.msra.mxu0 %v197_v63  ;;  %671 = vmatpush3.msra.mxu1 %v199_v1 }
  0x33   : > { %442 = vmatprep.subr.mxu0 %v191_v2  ;;  %672 = vmatprep.subr.mxu1 %v703_v0 }
  0x34   : > { %443 = vmatpush1.msra.mxu0 %v190_v3  ;;  %673 = vmatpush3.msra.mxu1 %v192_v4 }
  0x35   : > { %444 = vmatprep.subr.mxu0 %v184_v5  ;;  %674 = vmatprep.subr.mxu1 %v703_v0 }
  0x36   : > { %445 = vmatpush1.msra.mxu0 %v183_v6  ;;  %675 = vmatpush3.msra.mxu1 %v185_v7 }
  0x37   : > { %446 = vmatprep.subr.mxu0 %v177_v8  ;;  %676 = vmatprep.subr.mxu1 %v703_v0 }
  0x38   : > { %447 = vmatpush1.msra.mxu0 %v176_v9  ;;  %480 = vmatprep.mubr.f32.mxu0 %v703_v0 }
  0x39   : > { %677 = vmatpush3.msra.mxu1 %v178_v10  ;;  %678 = vmatprep.mubr.msk.f32.mxu1 %vm705_vm2, %v703_v0 }
  0x3a   : > { %642 = vmatmul.mubr.msk.f32.vlgmr.msra.gmra.mxu0 %vm248_vm1, %v794_v43  ;;  %679 = vmatmul.mubr.msk.f32.vlgmr.msra.gmra.mxu1 %vm248_vm1, %v794_v43 }
  0x89   : > { %v246_v11 = vpop.permute.xlu0 %245 }
  0xe4   : > { %v340_v12 = vpop.f32.mrf.mxu0 }
  0xe5   : > { %v341_v13 = vadd.f32 %v340_v12, %v246_v11  ;;  %v411_v14 = vpop.f32.mrf.mxu1 }
  0xe6   : > { %v412_v15 = vadd.f32 %v411_v14, %v246_v11  ;;  %v342_v16 = vpop.f32.mrf.mxu0 }
  0xe7   : > { %v557_v17 = vmax.f32 %v341_v13, 0.0  ;;  %v343_v18 = vadd.f32 %v342_v16, %v246_v11  ;;  %v413_v0 = vpop.f32.mrf.mxu1 }
  0xe8   : > { %v559_v19 = vmax.f32 %v412_v15, 0.0  ;;  %v414_v20 = vadd.f32 %v413_v0, %v246_v11 }
  0xe9   : > { %564 = vst [vmem:[%s170_s25] sm:$0x3f] %v557_v17  ;;  %v558_v21 = vmax.f32 %v343_v18, 0.0 }
  0xea   : > { %566 = vst [vmem:[%s170_s25 + $0x10] sm:$0x3f] %v559_v19  ;;  %v560_v22 = vmax.f32 %v414_v20, 0.0 }
  0xeb   : > { %565 = vst [vmem:[%s170_s25 + $0x8] sm:$0x3f] %v558_v21 }
  0xec   : > { %567 = vst [vmem:[%s170_s25 + $0x18] sm:$0x3f] %v560_v22 }
  0xfa   : > { %v482_v23 = vpop.f32.mrf.mxu0  ;;  %v553_v24 = vpop.f32.mrf.mxu1 }
  0xfb   : > { %v483_v25 = vadd.f32 %v482_v23, %v246_v11  ;;  %v554_v26 = vadd.f32 %v553_v24, %v246_v11 }
  0xfc   : > { %v484_v27 = vpop.f32.mrf.mxu0  ;;  %v680_v28 = vpop.f32.mrf.mxu1 }
  0xfd   : > { %v561_v29 = vmax.f32 %v483_v25, 0.0  ;;  %v563_v30 = vmax.f32 %v554_v26, 0.0  ;;  %v485_v31 = vadd.f32 %v484_v27, %v246_v11 }
  0xff   : > { %568 = vst [vmem:[%s170_s25 + $0x20] sm:$0x3f] %v561_v29  ;;  %571 = vst.msk [vmem:[%s170_s25 + $0x30] sm:$0x3f] %vm570_vm3, %v563_v30  ;;  %v562_v32 = vmax.f32 %v485_v31, 0.0 }
 0x101   : > { %569 = vst [vmem:[%s170_s25 + $0x28] sm:$0x3f] %v562_v32 }
 0x102 PF: > { %s13_s12 = sadd.s32 1, %s701_s12  }
 0x103   : > { %p10_p4 = scmp.ge.s32.totalorder %s13_s12, 4  }
 0x105   :  { %12 = sbr.rel (!%p10_p4) target bundleno = 1 (0x1), region = 62 }

// kernel: net_forward.6
= control target key start
LH: loop header
LB: loop body
LE: loop exit
PB: predicated region body
PF: predicated region fallthrough
CT: control target
= control target key end

     0   :  { %vm46_vm0 = vcmask 556032   ;;  %vm49_vm1 = vcmask 551936   ;;  %s141_s0 = inlined_call_operand.vmem [shape: f32[12,196], index: 0, kind: input, shape index: {}]   ;;  %s142_s1 = inlined_call_operand.vmem [shape: f32[12,196], index: 1, kind: input, shape index: {}]   ;;  %s143_s2 = inlined_call_operand.vmem [shape: f32[12,196], index: 2, kind: input, shape index: {}]   ;;  %s144_s3 = inlined_call_operand.vmem [shape: f32[12,196], index: 3, kind: input, shape index: {}]   ;;  %s145_s4 = inlined_call_operand.vmem [shape: f32[12,196], index: 4, kind: output, shape index: {}]  }
   0x1   :  { %v17_v0 = vld [vmem:[%s141_s0] sm:$0xff]  ;;  %v18_v5 = vld [vmem:[%s141_s0 + $0x8] sm:$0xff]  ;;  %v19_v11 = vld [vmem:[%s141_s0 + $0x10] sm:$0xf] }
   0x2   :  { %v21_v1 = vld [vmem:[%s142_s1] sm:$0xff]  ;;  %v22_v6 = vld [vmem:[%s142_s1 + $0x8] sm:$0xff]  ;;  %v23_v13 = vld [vmem:[%s142_s1 + $0x10] sm:$0xf] }
   0x3   :  { %v29_v2 = vld [vmem:[%s143_s2] sm:$0xff]  ;;  %v25_v3 = vmax.f32 %v17_v0, %v21_v1  ;;  %v26_v8 = vmax.f32 %v18_v5, %v22_v6  ;;  %v30_v9 = vld [vmem:[%s143_s2 + $0x8] sm:$0xff]  ;;  %v31_v14 = vld [vmem:[%s143_s2 + $0x10] sm:$0xf]  ;;  %v27_v17 = vmax.f32 %v19_v11, %v23_v13 }
   0x4   :  { %v33_v4 = vld [vmem:[%s144_s3] sm:$0xff]  ;;  %v34_v10 = vld [vmem:[%s144_s3 + $0x8] sm:$0xff]  ;;  %v35_v15 = vld [vmem:[%s144_s3 + $0x10] sm:$0xf] }
   0x5   :  { %v37_v7 = vmax.f32 %v29_v2, %v33_v4  ;;  %v38_v12 = vmax.f32 %v30_v9, %v34_v10  ;;  %v39_v18 = vmax.f32 %v31_v14, %v35_v15  ;;  %v20_v19 = vld [vmem:[%s141_s0 + $0x18] sm:$0xf] }
   0x6   :  { %v24_v20 = vld [vmem:[%s142_s1 + $0x18] sm:$0xf] }
   0x7   :  { %v41_v16 = vmax.f32 %v25_v3, %v37_v7  ;;  %v32_v21 = vld [vmem:[%s143_s2 + $0x18] sm:$0xf]  ;;  %v42_v22 = vmax.f32 %v26_v8, %v38_v12  ;;  %v28_v23 = vmax.f32 %v20_v19, %v24_v20  ;;  %v43_v25 = vmax.f32 %v27_v17, %v39_v18 }
   0x8   :  { %v36_v24 = vld [vmem:[%s144_s3 + $0x18] sm:$0xf] }
   0x9   :  { %45 = vst [vmem:[%s145_s4] sm:$0xff] %v41_v16  ;;  %v40_v26 = vmax.f32 %v32_v21, %v36_v24  ;;  %47 = vst.msk [vmem:[%s145_s4 + $0x8] sm:$0xff] %vm46_vm0, %v42_v22 }
   0xa   :  { %48 = vst [vmem:[%s145_s4 + $0x10] sm:$0xf] %v43_v25 }
   0xb   :  { %v44_v27 = vmax.f32 %v28_v23, %v40_v26 }
   0xd   :  { %50 = vst.msk [vmem:[%s145_s4 + $0x18] sm:$0xf] %vm49_vm1, %v44_v27 }

// kernel: net_forward.7
= control target key start
LH: loop header
LB: loop body
LE: loop exit
PB: predicated region body
PF: predicated region fallthrough
CT: control target
= control target key end

     0   :  { %s446_s12 = smov 0   ;;  %s544_s0 = inlined_call_operand.vmem [shape: f32[2,150,100], index: 0, kind: input, shape index: {}]   ;;  %s545_s1 = inlined_call_operand.vmem [shape: f32[16,150], index: 1, kind: input, shape index: {}]   ;;  %s546_s2 = inlined_call_operand.vmem [shape: f32[16,1], index: 2, kind: input, shape index: {}]   ;;  %s547_s3 = inlined_call_operand.vmem [shape: f32[2,16,100], index: 3, kind: output, shape index: {}]  }
   0x1 LB: > { %s352_s13 = sadd.s32 4294967295, %s422_s12   ;;  %p356_p0 = scmp.ge.s32.totalorder %s422_s12, 1  ;;  %s422_s12 = sphi %s446_s12, %s13_s12  }
   0x2   : > { %p137_p1 = scmp.lt.s32.totalorder %s422_s12, 3 }
   0x4   : > { %p138_p2 = pnand %p356_p0, %p137_p1 }
   0x5   : > { %p161_p3 = scmp.lt.s32.totalorder (!%p138_p2), %s352_s13, 1 }
   0x6   : > { %141 = sbr.rel (%p138_p2) target bundleno = 251 (0xfb), region = 32 }
   0xb   : > { %v172_v0 = vld [vmem:[%s545_s1 + $0x8] sm:$0xff]  ;;  %vm206_vm0 = vcmask 179200   ;;  %v174_v1 = vld [vmem:[%s545_s1 + $0x18] sm:$0xff]  ;;  %v424_v2 = vmov 0.0   ;;  %v194_v3 = vld [vmem:[%s546_s2] sm:$0xff]  ;;  %s549_s13 = smov (!%p161_p3, %s352_s13), 1 }
   0xc   : > { %217 = vmatprep.subr.mxu0 %v424_v2  ;;  %366 = vmatprep.subr.mxu1 %v424_v2  ;;  %v425_v4 = vmov 0   ;;  %s404_s20 = smul.u32 152, %s549_s13  ;;  %vm213_vm1 = vcmask 1045504   ;;  %v171_v24 = vld [vmem:[%s545_s1] sm:$0xff]  ;;  %v173_v25 = vld [vmem:[%s545_s1 + $0x10] sm:$0xff]  ;;  %v195_v26 = vld [vmem:[%s546_s2 + $0x8] sm:$0xff] }
   0xd   : > { %361 = vmatprep.mubr.msk.f32.mxu0 %vm206_vm0, %v172_v0  ;;  %362 = vmatprep.mubr.msk.f32.mxu1 %vm206_vm0, %v174_v1  ;;  %s365_s30 = sshll.u32 %s549_s13, 4  ;;  %vm294_vm2 = vcmask 818176  }
   0xe   : > { %415 = vset.pattern.permute.xlu0 %v425_v4  ;;  %s471_s23 = scalar_lea.vmem %s544_s0, %s404_s20  ;;  %s170_s6 = scalar_lea.vmem %s547_s3, %s365_s30 }
   0xf   : > { %198 = vperm.xlu0 %415, %v194_v3   ;;  %v190_v5 = vld [vmem:[%s471_s23 + $0x78] sm:$0xff]  ;;  %v189_v6 = vld [vmem:[%s471_s23 + $0x70] sm:$0xff]  ;;  %v188_v7 = vld [vmem:[%s471_s23 + $0x68] sm:$0xff] }
  0x10   : > { %218 = vmatpush1.msra.mxu0 %v190_v5  ;;  %385 = vmatpush1.msra.mxu1 %v190_v5  ;;  %v187_v8 = vld [vmem:[%s471_s23 + $0x60] sm:$0xff]  ;;  %v186_v9 = vld [vmem:[%s471_s23 + $0x58] sm:$0xff]  ;;  %v185_v10 = vld [vmem:[%s471_s23 + $0x50] sm:$0xff] }
  0x11   : > { %219 = vmatprep.subr.mxu0 %v424_v2  ;;  %367 = vmatprep.subr.mxu1 %v424_v2  ;;  %v184_v11 = vld [vmem:[%s471_s23 + $0x48] sm:$0xff]  ;;  %v183_v12 = vld [vmem:[%s471_s23 + $0x40] sm:$0xff]  ;;  %v182_v13 = vld [vmem:[%s471_s23 + $0x38] sm:$0xff] }
  0x12   : > { %220 = vmatpush1.msra.mxu0 %v189_v6  ;;  %386 = vmatpush1.msra.mxu1 %v189_v6  ;;  %v181_v14 = vld [vmem:[%s471_s23 + $0x30] sm:$0xff]  ;;  %v180_v15 = vld [vmem:[%s471_s23 + $0x28] sm:$0xff]  ;;  %v179_v16 = vld [vmem:[%s471_s23 + $0x20] sm:$0xff] }
  0x13   : > { %221 = vmatprep.subr.mxu0 %v424_v2  ;;  %368 = vmatprep.subr.mxu1 %v424_v2  ;;  %v178_v17 = vld [vmem:[%s471_s23 + $0x18] sm:$0xff]  ;;  %v177_v18 = vld [vmem:[%s471_s23 + $0x10] sm:$0xff]  ;;  %v176_v19 = vld [vmem:[%s471_s23 + $0x8] sm:$0xff] }
  0x14   : > { %222 = vmatpush1.msra.mxu0 %v188_v7  ;;  %387 = vmatpush1.msra.mxu1 %v188_v7  ;;  %v175_v20 = vld [vmem:[%s471_s23] sm:$0xff]  ;;  %v193_v21 = vld [vmem:[%s471_s23 + $0x90] sm:$0x3f]  ;;  %v192_v22 = vld [vmem:[%s471_s23 + $0x88] sm:$0xff] }
  0x15   : > { %223 = vmatprep.subr.mxu0 %v424_v2  ;;  %369 = vmatprep.subr.mxu1 %v424_v2  ;;  %v191_v23 = vld [vmem:[%s471_s23 + $0x80] sm:$0xff] }
  0x16   : > { %224 = vmatpush1.msra.mxu0 %v187_v8  ;;  %388 = vmatpush1.msra.mxu1 %v187_v8 }
  0x17   : > { %225 = vmatprep.subr.mxu0 %v424_v2  ;;  %370 = vmatprep.subr.mxu1 %v424_v2 }
  0x18   : > { %226 = vmatpush1.msra.mxu0 %v186_v9  ;;  %389 = vmatpush1.msra.mxu1 %v186_v9 }
  0x19   : > { %227 = vmatprep.subr.mxu0 %v424_v2  ;;  %371 = vmatprep.subr.mxu1 %v424_v2 }
  0x1a   : > { %228 = vmatpush1.msra.mxu0 %v185_v10  ;;  %390 = vmatpush1.msra.mxu1 %v185_v10 }
  0x1b   : > { %229 = vmatprep.subr.mxu0 %v424_v2  ;;  %372 = vmatprep.subr.mxu1 %v424_v2 }
  0x1c   : > { %230 = vmatpush1.msra.mxu0 %v184_v11  ;;  %391 = vmatpush1.msra.mxu1 %v184_v11 }
  0x1d   : > { %231 = vmatprep.subr.mxu0 %v424_v2  ;;  %373 = vmatprep.subr.mxu1 %v424_v2 }
  0x1e   : > { %232 = vmatpush1.msra.mxu0 %v183_v12  ;;  %392 = vmatpush1.msra.mxu1 %v183_v12 }
  0x1f   : > { %233 = vmatprep.subr.mxu0 %v424_v2  ;;  %374 = vmatprep.subr.mxu1 %v424_v2 }
  0x20   : > { %234 = vmatpush1.msra.mxu0 %v182_v13  ;;  %393 = vmatpush1.msra.mxu1 %v182_v13 }
  0x21   : > { %235 = vmatprep.subr.mxu0 %v424_v2  ;;  %375 = vmatprep.subr.mxu1 %v424_v2 }
  0x22   : > { %236 = vmatpush1.msra.mxu0 %v181_v14  ;;  %394 = vmatpush1.msra.mxu1 %v181_v14 }
  0x23   : > { %237 = vmatprep.subr.mxu0 %v424_v2  ;;  %376 = vmatprep.subr.mxu1 %v424_v2 }
  0x24   : > { %238 = vmatpush1.msra.mxu0 %v180_v15  ;;  %395 = vmatpush1.msra.mxu1 %v180_v15 }
  0x25   : > { %239 = vmatprep.subr.mxu0 %v424_v2  ;;  %377 = vmatprep.subr.mxu1 %v424_v2 }
  0x26   : > { %240 = vmatpush1.msra.mxu0 %v179_v16  ;;  %396 = vmatpush1.msra.mxu1 %v179_v16 }
  0x27   : > { %241 = vmatprep.subr.mxu0 %v424_v2  ;;  %378 = vmatprep.subr.mxu1 %v424_v2 }
  0x28   : > { %242 = vmatpush1.msra.mxu0 %v178_v17  ;;  %397 = vmatpush1.msra.mxu1 %v178_v17 }
  0x29   : > { %243 = vmatprep.subr.mxu0 %v424_v2  ;;  %379 = vmatprep.subr.mxu1 %v424_v2 }
  0x2a   : > { %244 = vmatpush1.msra.mxu0 %v177_v18  ;;  %398 = vmatpush1.msra.mxu1 %v177_v18 }
  0x2b   : > { %245 = vmatprep.subr.mxu0 %v424_v2  ;;  %380 = vmatprep.subr.mxu1 %v424_v2 }
  0x2c   : > { %246 = vmatpush1.msra.mxu0 %v176_v19  ;;  %399 = vmatpush1.msra.mxu1 %v176_v19 }
  0x2d   : > { %247 = vmatprep.subr.mxu0 %v424_v2  ;;  %381 = vmatprep.subr.mxu1 %v424_v2 }
  0x2e   : > { %248 = vmatpush1.msra.mxu0 %v175_v20  ;;  %400 = vmatpush1.msra.mxu1 %v175_v20 }
  0x2f   : > { %275 = vmatprep.subr.mxu0 %v424_v2  ;;  %382 = vmatprep.subr.mxu1 %v424_v2 }
  0x30   : > { %360 = vmatpush2.msk.msra.mxu0 %vm213_vm1, %v193_v21  ;;  %401 = vmatpush2.msk.msra.mxu1 %vm213_vm1, %v193_v21 }
  0x31   : > { %277 = vmatprep.subr.mxu0 %v424_v2  ;;  %383 = vmatprep.subr.mxu1 %v424_v2 }
  0x32   : > { %278 = vmatpush2.msra.mxu0 %v192_v22  ;;  %402 = vmatpush2.msra.mxu1 %v192_v22 }
  0x33   : > { %279 = vmatprep.subr.mxu0 %v424_v2  ;;  %384 = vmatprep.subr.mxu1 %v424_v2 }
  0x34   : > { %280 = vmatpush2.msra.mxu0 %v191_v23  ;;  %403 = vmatpush2.msra.mxu1 %v191_v23 }
  0x35   : > { %282 = vmatmul.mubr.f32.vlgmr.msra.gmra.mxu0 %v171_v24  ;;  %287 = vmatmul.mubr.f32.vlgmr.msra.gmra.mxu1 %v173_v25 }
  0x36   : > { %203 = vperm.xlu0 %415, %v195_v26  }
  0x8a   : > { %v199_v27 = vpop.permute.xlu0 %198 }
  0xb1   : > { %v204_v28 = vpop.permute.xlu0 %203 }
  0xf5   : > { %v283_v29 = vpop.f32.mrf.mxu0  ;;  %v288_v30 = vpop.f32.mrf.mxu1 }
  0xf6   : > { %v284_v31 = vadd.f32 %v283_v29, %v199_v27  ;;  %v289_v32 = vadd.f32 %v288_v30, %v204_v28 }
  0xf7   : > { %v285_v33 = vpop.f32.mrf.mxu0  ;;  %v290_v34 = vpop.f32.mrf.mxu1 }
  0xf8   : > { %v292_v35 = vmax.f32 %v284_v31, 0.0  ;;  %v293_v36 = vmax.f32 %v289_v32, 0.0 }
  0xfa   : > { %295 = vst.msk [vmem:[%s170_s6] sm:$0xff] %vm294_vm2, %v292_v35  ;;  %296 = vst.msk [vmem:[%s170_s6 + $0x8] sm:$0xff] %vm294_vm2, %v293_v36 }
  0xfb PF: > { %s13_s12 = sadd.s32 1, %s422_s12  }
  0xfc   : > { %p10_p4 = scmp.ge.s32.totalorder %s13_s12, 4  }
  0xfe   :  { %12 = sbr.rel (!%p10_p4) target bundleno = 1 (0x1), region = 62 }

// kernel: net_forward.8
= control target key start
LH: loop header
LB: loop body
LE: loop exit
PB: predicated region body
PF: predicated region fallthrough
CT: control target
= control target key end

     0   :  { %vm45_vm0 = vcmask 203776   ;;  %s143_s0 = inlined_call_operand.vmem [shape: f32[32,25], index: 0, kind: input, shape index: {}]   ;;  %s144_s1 = inlined_call_operand.vmem [shape: f32[32,25], index: 1, kind: input, shape index: {}]   ;;  %s145_s2 = inlined_call_operand.vmem [shape: f32[32,25], index: 2, kind: input, shape index: {}]   ;;  %s146_s3 = inlined_call_operand.vmem [shape: f32[32,25], index: 3, kind: input, shape index: {}]   ;;  %s147_s4 = inlined_call_operand.vmem [shape: f32[32,25], index: 4, kind: output, shape index: {}]  }
   0x1   :  { %v17_v0 = vld [vmem:[%s143_s0] sm:$0xff]  ;;  %v18_v5 = vld [vmem:[%s143_s0 + $0x8] sm:$0xff]  ;;  %v19_v11 = vld [vmem:[%s143_s0 + $0x10] sm:$0xff] }
   0x2   :  { %v21_v1 = vld [vmem:[%s144_s1] sm:$0xff]  ;;  %v22_v6 = vld [vmem:[%s144_s1 + $0x8] sm:$0xff]  ;;  %v23_v13 = vld [vmem:[%s144_s1 + $0x10] sm:$0xff] }
   0x3   :  { %v29_v2 = vld [vmem:[%s145_s2] sm:$0xff]  ;;  %v25_v3 = vmax.f32 %v17_v0, %v21_v1  ;;  %v26_v8 = vmax.f32 %v18_v5, %v22_v6  ;;  %v30_v9 = vld [vmem:[%s145_s2 + $0x8] sm:$0xff]  ;;  %v31_v14 = vld [vmem:[%s145_s2 + $0x10] sm:$0xff]  ;;  %v27_v17 = vmax.f32 %v19_v11, %v23_v13 }
   0x4   :  { %v33_v4 = vld [vmem:[%s146_s3] sm:$0xff]  ;;  %v34_v10 = vld [vmem:[%s146_s3 + $0x8] sm:$0xff]  ;;  %v35_v15 = vld [vmem:[%s146_s3 + $0x10] sm:$0xff] }
   0x5   :  { %v37_v7 = vmax.f32 %v29_v2, %v33_v4  ;;  %v38_v12 = vmax.f32 %v30_v9, %v34_v10  ;;  %v39_v18 = vmax.f32 %v31_v14, %v35_v15  ;;  %v20_v19 = vld [vmem:[%s143_s0 + $0x18] sm:$0xff] }
   0x6   :  { %v24_v20 = vld [vmem:[%s144_s1 + $0x18] sm:$0xff] }
   0x7   :  { %v41_v16 = vmax.f32 %v25_v3, %v37_v7  ;;  %v32_v21 = vld [vmem:[%s145_s2 + $0x18] sm:$0xff]  ;;  %v42_v22 = vmax.f32 %v26_v8, %v38_v12  ;;  %v28_v23 = vmax.f32 %v20_v19, %v24_v20  ;;  %v43_v25 = vmax.f32 %v27_v17, %v39_v18 }
   0x8   :  { %v36_v24 = vld [vmem:[%s146_s3 + $0x18] sm:$0xff] }
   0x9   :  { %46 = vst.msk [vmem:[%s147_s4] sm:$0xff] %vm45_vm0, %v41_v16  ;;  %v40_v26 = vmax.f32 %v32_v21, %v36_v24  ;;  %47 = vst.msk [vmem:[%s147_s4 + $0x8] sm:$0xff] %vm45_vm0, %v42_v22 }
   0xa   :  { %48 = vst.msk [vmem:[%s147_s4 + $0x10] sm:$0xff] %vm45_vm0, %v43_v25 }
   0xb   :  { %v44_v27 = vmax.f32 %v28_v23, %v40_v26 }
   0xd   :  { %49 = vst.msk [vmem:[%s147_s4 + $0x18] sm:$0xff] %vm45_vm0, %v44_v27 }

// kernel: net_forward.9
= control target key start
LH: loop header
LB: loop body
LE: loop exit
PB: predicated region body
PF: predicated region fallthrough
CT: control target
= control target key end

     0   :  { %v614_v3 = vmov 0.0   ;;  %v615_v23 = vmov 1983009808   ;;  %v90_v25 = vlaneseq  ;;  %s947_s0 = inlined_call_operand.vmem [shape: f32[2,400], index: 0, kind: input, shape index: {}]   ;;  %s948_s1 = inlined_call_operand.vmem [shape: f32[400,120], index: 1, kind: input, shape index: {}]   ;;  %s949_s2 = inlined_call_operand.vmem [shape: f32[1,120], index: 2, kind: input, shape index: {}]   ;;  %s950_s3 = inlined_call_operand.vmem [shape: f32[120,84], index: 3, kind: input, shape index: {}]   ;;  %s951_s4 = inlined_call_operand.vmem [shape: f32[1,84], index: 4, kind: input, shape index: {}]   ;;  %s952_s5 = inlined_call_operand.vmem [shape: f32[84,10], index: 5, kind: input, shape index: {}]   ;;  %s953_s6 = inlined_call_operand.vmem [shape: f32[1,10], index: 6, kind: input, shape index: {}]   ;;  %s954_s7 = inlined_call_operand.hbm [shape: f32[2,10], index: 7, kind: output, shape index: {}]  }
   0x1   :  { %v59_v0 = vld [vmem:[%s948_s1 + $0xf8] sm:$0xff]  ;;  %179 = vmatprep.subr.mxu1 %v614_v3  ;;  %v58_v4 = vld [vmem:[%s948_s1 + $0xf0] sm:$0xff]  ;;  %v57_v7 = vld [vmem:[%s948_s1 + $0xe8] sm:$0xff]  ;;  %v88_v24 = vunpack.c.l.s4 %v615_v23 }
   0x2   :  { %v43_v1 = vld [vmem:[%s948_s1 + $0x78] sm:$0xff]  ;;  %466 = vmatprep.subr.mxu0 %v59_v0  ;;  %v42_v5 = vld [vmem:[%s948_s1 + $0x70] sm:$0xff]  ;;  %v41_v8 = vld [vmem:[%s948_s1 + $0x68] sm:$0xff]  ;;  %v91_v33 = vshrl.u32 %v90_v25, 7 }
   0x3   :  { %v75_v2 = vld [vmem:[%s948_s1 + $0x178] sm:$0xff]  ;;  %v74_v6 = vld [vmem:[%s948_s1 + $0x170] sm:$0xff]  ;;  %467 = vmatpush3.msra.mxu0 %v43_v1  ;;  %v73_v9 = vld [vmem:[%s948_s1 + $0x168] sm:$0xff]  ;;  %v89_v32 = vunpack.c.0.s8 %v88_v24 }
   0x4   :  { %180 = vmatpush1.msra.mxu1 %v75_v2  ;;  %468 = vmatprep.subr.mxu0 %v58_v4  ;;  %v56_v10 = vld [vmem:[%s948_s1 + $0xe0] sm:$0xff]  ;;  %v55_v13 = vld [vmem:[%s948_s1 + $0xd8] sm:$0xff]  ;;  %v54_v16 = vld [vmem:[%s948_s1 + $0xd0] sm:$0xff] }
   0x5   :  { %181 = vmatprep.subr.mxu1 %v614_v3  ;;  %469 = vmatpush3.msra.mxu0 %v42_v5  ;;  %v40_v11 = vld [vmem:[%s948_s1 + $0x60] sm:$0xff]  ;;  %v39_v14 = vld [vmem:[%s948_s1 + $0x58] sm:$0xff]  ;;  %v38_v17 = vld [vmem:[%s948_s1 + $0x50] sm:$0xff]  ;;  %v92_v40 = vsub.s32 %v89_v32, %v91_v33 }
   0x6   :  { %182 = vmatpush1.msra.mxu1 %v74_v6  ;;  %470 = vmatprep.subr.mxu0 %v57_v7  ;;  %v72_v12 = vld [vmem:[%s948_s1 + $0x160] sm:$0xff]  ;;  %v71_v15 = vld [vmem:[%s948_s1 + $0x158] sm:$0xff]  ;;  %v70_v18 = vld [vmem:[%s948_s1 + $0x150] sm:$0xff] }
   0x7   :  { %183 = vmatprep.subr.mxu1 %v614_v3  ;;  %471 = vmatpush3.msra.mxu0 %v41_v8  ;;  %v53_v19 = vld [vmem:[%s948_s1 + $0xc8] sm:$0xff]  ;;  %v52_v22 = vld [vmem:[%s948_s1 + $0xc0] sm:$0xff]  ;;  %v51_v28 = vld [vmem:[%s948_s1 + $0xb8] sm:$0xff] }
   0x8   :  { %184 = vmatpush1.msra.mxu1 %v73_v9  ;;  %472 = vmatprep.subr.mxu0 %v56_v10  ;;  %v37_v20 = vld [vmem:[%s948_s1 + $0x48] sm:$0xff]  ;;  %v36_v26 = vld [vmem:[%s948_s1 + $0x40] sm:$0xff]  ;;  %v35_v29 = vld [vmem:[%s948_s1 + $0x38] sm:$0xff] }
   0x9   :  { %185 = vmatprep.subr.mxu1 %v614_v3  ;;  %473 = vmatpush3.msra.mxu0 %v40_v11  ;;  %v69_v21 = vld [vmem:[%s948_s1 + $0x148] sm:$0xff]  ;;  %v68_v27 = vld [vmem:[%s948_s1 + $0x140] sm:$0xff]  ;;  %v67_v30 = vld [vmem:[%s948_s1 + $0x138] sm:$0xff] }
   0xa   :  { %186 = vmatpush1.msra.mxu1 %v72_v12  ;;  %474 = vmatprep.subr.mxu0 %v55_v13  ;;  %v50_v31 = vld [vmem:[%s948_s1 + $0xb0] sm:$0xff]  ;;  %v49_v36 = vld [vmem:[%s948_s1 + $0xa8] sm:$0xff]  ;;  %v48_v39 = vld [vmem:[%s948_s1 + $0xa0] sm:$0xff] }
   0xb   :  { %187 = vmatprep.subr.mxu1 %v614_v3  ;;  %475 = vmatpush3.msra.mxu0 %v39_v14  ;;  %v34_v34 = vld [vmem:[%s948_s1 + $0x30] sm:$0xff]  ;;  %v33_v37 = vld [vmem:[%s948_s1 + $0x28] sm:$0xff] }
   0xc   :  { %188 = vmatpush1.msra.mxu1 %v71_v15  ;;  %476 = vmatprep.subr.mxu0 %v54_v16  ;;  %v66_v35 = vld [vmem:[%s948_s1 + $0x130] sm:$0xff]  ;;  %v65_v38 = vld [vmem:[%s948_s1 + $0x128] sm:$0xff] }
   0xd   :  { %189 = vmatprep.subr.mxu1 %v614_v3  ;;  %477 = vmatpush3.msra.mxu0 %v38_v17 }
   0xe   :  { %190 = vmatpush1.msra.mxu1 %v70_v18  ;;  %478 = vmatprep.subr.mxu0 %v53_v19 }
   0xf   :  { %191 = vmatprep.subr.mxu1 %v614_v3  ;;  %479 = vmatpush3.msra.mxu0 %v37_v20 }
  0x10   :  { %192 = vmatpush1.msra.mxu1 %v69_v21  ;;  %480 = vmatprep.subr.mxu0 %v52_v22 }
  0x11   :  { %193 = vmatprep.subr.mxu1 %v614_v3  ;;  %481 = vmatpush3.msra.mxu0 %v36_v26 }
  0x12   :  { %194 = vmatpush1.msra.mxu1 %v68_v27  ;;  %482 = vmatprep.subr.mxu0 %v51_v28 }
  0x13   :  { %195 = vmatprep.subr.mxu1 %v614_v3  ;;  %483 = vmatpush3.msra.mxu0 %v35_v29 }
  0x14   :  { %196 = vmatpush1.msra.mxu1 %v67_v30  ;;  %484 = vmatprep.subr.mxu0 %v50_v31 }
  0x15   :  { %197 = vmatprep.subr.mxu1 %v614_v3  ;;  %485 = vmatpush3.msra.mxu0 %v34_v34 }
  0x16   :  { %198 = vmatpush1.msra.mxu1 %v66_v35 }
  0x17   :  { %12 = vsyncpa [#allocation3], 0  ;;  %486 = vmatprep.subr.mxu0 %v49_v36  ;;  %199 = vmatprep.subr.mxu1 %v614_v3  ;;  %v32_v41 = vld [vmem:[%s948_s1 + $0x20] sm:$0xff]  ;;  %v47_v44 = vld [vmem:[%s948_s1 + $0x98] sm:$0xff]  ;;  %vm106_vm0 = vcmask 130048   ;;  %vm616_vm1 = vmmov 0  }
  0x18   :  { %v64_v42 = vld [vmem:[%s948_s1 + $0x120] sm:$0xff]  ;;  %487 = vmatpush3.msra.mxu0 %v33_v37  ;;  %200 = vmatpush1.msra.mxu1 %v65_v38  ;;  %v31_v46 = vld [vmem:[%s948_s1 + $0x18] sm:$0xff]  ;;  %v46_v48 = vld [vmem:[%s948_s1 + $0x90] sm:$0xff]  ;;  %vm369_vm2 = vcmask 1043456   ;;  %vm272_vm3 = vcmask 982016   ;;  %vm365_vm4 = vcmask 687104  }
  0x19   :  { %v27_v43 = vld [vmem:[%s947_s0] sm:$0xff]  ;;  %488 = vmatprep.subr.mxu0 %v48_v39  ;;  %201 = vmatprep.subr.mxu1 %v614_v3  ;;  %v63_v47 = vld [vmem:[%s948_s1 + $0x118] sm:$0xff]  ;;  %v30_v50 = vld [vmem:[%s948_s1 + $0x10] sm:$0xff]  ;;  %vm443_vm5 = vcmask 74752  }
  0x1a   :  { %v86_v45 = vcombine.high %v27_v43, %v27_v43  ;;  %489 = vmatpush3.msra.mxu0 %v32_v41  ;;  %202 = vmatpush1.msra.mxu1 %v64_v42  ;;  %v93_v49 = vrot.slane %v27_v43, %v92_v40  ;;  %v62_v51 = vld [vmem:[%s948_s1 + $0x110] sm:$0xff]  ;;  %v45_v52 = vld [vmem:[%s948_s1 + $0x88] sm:$0xff]  ;;  %v44_v56 = vld [vmem:[%s948_s1 + $0x80] sm:$0xff] }
  0x1b   :  { %490 = vmatprep.subr.mxu0 %v47_v44  ;;  %203 = vmatprep.subr.mxu1 %v614_v3  ;;  %v29_v54 = vld [vmem:[%s948_s1 + $0x8] sm:$0xff]  ;;  %v28_v58 = vld [vmem:[%s948_s1] sm:$0xff]  ;;  %v264_v62 = vld [vmem:[%s950_s3 + $0x70] sm:$0xff] }
  0x1c   :  { %491 = vmatpush3.msra.mxu0 %v31_v46  ;;  %204 = vmatpush1.msra.mxu1 %v63_v47  ;;  %v100_v53 = vrot.slane %v86_v45, %v92_v40  ;;  %v61_v55 = vld [vmem:[%s948_s1 + $0x108] sm:$0xff]  ;;  %v101_v57 = vcombine.high %v93_v49, %v93_v49  ;;  %v60_v59 = vld [vmem:[%s948_s1 + $0x100] sm:$0xff]  ;;  %v261_v2 = vld [vmem:[%s950_s3 + $0x58] sm:$0xff] }
  0x1d   :  { %492 = vmatprep.subr.mxu0 %v46_v48  ;;  %205 = vmatprep.subr.mxu1 %v614_v3  ;;  %v77_v61 = vld [vmem:[%s948_s1 + $0x188] sm:$0xff]  ;;  %v76_v63 = vld [vmem:[%s948_s1 + $0x180] sm:$0xff]  ;;  %v260_v4 = vld [vmem:[%s950_s3 + $0x50] sm:$0xff]  ;;  %s617_s1 = smov [#allocation2]  }
  0x1e   :  { %493 = vmatpush3.msra.mxu0 %v30_v50  ;;  %206 = vmatpush1.msra.mxu1 %v62_v51  ;;  %v102_v60 = vcombine.high %v100_v53, %v100_v53  ;;  %v263_v0 = vld [vmem:[%s950_s3 + $0x68] sm:$0xff]  ;;  %v262_v1 = vld [vmem:[%s950_s3 + $0x60] sm:$0xff]  ;;  %v257_v7 = vld [vmem:[%s950_s3 + $0x38] sm:$0xff]  ;;  %s451_s15 = sshll.u32 %s617_s1, 4  ;;  %s452_s15 = int_to_ptr.vmem [resolvable:$true] %s451_s15 }
  0x1f   :  { %494 = vmatprep.subr.mxu0 %v45_v52  ;;  %207 = vmatprep.subr.mxu1 %v614_v3  ;;  %v259_v5 = vld [vmem:[%s950_s3 + $0x48] sm:$0xff]  ;;  %v258_v6 = vld [vmem:[%s950_s3 + $0x40] sm:$0xff]  ;;  %v256_v8 = vld [vmem:[%s950_s3 + $0x30] sm:$0xff]  ;;  %p597_p1 = scmp.lt.s32.totalorder %s452_s15, %s452_s15 }
  0x20   :  { %495 = vmatpush3.msra.mxu0 %v29_v54  ;;  %208 = vmatpush1.msra.mxu1 %v61_v55  ;;  %v255_v9 = vld [vmem:[%s950_s3 + $0x28] sm:$0xff]  ;;  %v254_v10 = vld [vmem:[%s950_s3 + $0x20] sm:$0xff]  ;;  %v253_v11 = vld [vmem:[%s950_s3 + $0x18] sm:$0xff] }
  0x21   :  { %496 = vmatprep.subr.mxu0 %v44_v56  ;;  %209 = vmatprep.subr.mxu1 %v614_v3  ;;  %v252_v12 = vld [vmem:[%s950_s3 + $0x10] sm:$0xff]  ;;  %v251_v13 = vld [vmem:[%s950_s3 + $0x8] sm:$0xff]  ;;  %v250_v14 = vld [vmem:[%s950_s3] sm:$0xff] }
  0x22   :  { %497 = vmatpush3.msra.mxu0 %v28_v58  ;;  %173 = vmatprep.mubr.f32.mxu0 %v101_v57  ;;  %v357_v15 = vld [vmem:[%s952_s5 + $0x50] sm:$0xf]  ;;  %v356_v16 = vld [vmem:[%s952_s5 + $0x48] sm:$0xff]  ;;  %v355_v17 = vld [vmem:[%s952_s5 + $0x40] sm:$0xff] }
  0x23   :  { %210 = vmatpush1.msra.mxu1 %v60_v59  ;;  %174 = vmatmul.mubr.f32.vlgmr.msra.gmra.mxu0 %v93_v49  ;;  %v354_v18 = vld [vmem:[%s952_s5 + $0x38] sm:$0xff]  ;;  %v353_v19 = vld [vmem:[%s952_s5 + $0x30] sm:$0xff]  ;;  %v352_v20 = vld [vmem:[%s952_s5 + $0x28] sm:$0xff] }
  0x24   :  { %239 = vmatprep.subr.mxu1 %v614_v3  ;;  %460 = vmatprep.mubr.msk.f32.mxu1 %vm106_vm0, %v102_v60  ;;  %v351_v21 = vld [vmem:[%s952_s5 + $0x20] sm:$0xff]  ;;  %v350_v22 = vld [vmem:[%s952_s5 + $0x18] sm:$0xff]  ;;  %v349_v32 = vld [vmem:[%s952_s5 + $0x10] sm:$0xff] }
  0x25   :  { %240 = vmatpush2.msra.mxu1 %v77_v61  ;;  %529 = vmatprep.subr.mxu0 %v614_v3  ;;  %v459_v25 = vld [vmem:[%s949_s2] ss:$0 sm:$0xff]  ;;  %v348_v33 = vld [vmem:[%s952_s5 + $0x8] sm:$0xff] }
  0x26   :  { %241 = vmatprep.subr.mxu1 %v614_v3  ;;  %530 = vmatpush3.msra.mxu0 %v264_v62  ;;  %v347_v34 = vld [vmem:[%s952_s5] sm:$0xff]  ;;  %s592_s5 = scalar_lea.vmem %s452_s15, 32 }
  0x27   :  { %242 = vmatpush2.msra.mxu1 %v76_v63  ;;  %531 = vmatprep.subr.mxu0 %v614_v3  ;;  %v461_v35 = vld [vmem:[%s951_s4] ss:$0 sm:$0xff]  ;;  %p593_p0 = scmp.ne.s32.totalorder %s452_s15, %s592_s5  ;;  %p598_p2 = scmp.lt.s32.totalorder %s592_s5, %s592_s5 }
  0x28   :  { %244 = vmatmul.mubr.f32.vlgmr.msra.gmra.mxu1 %v100_v53  ;;  %532 = vmatpush3.msra.mxu0 %v263_v0  ;;  %v463_v40 = vld [vmem:[%s953_s6] ss:$0 sm:$0xff] }
  0x29   :  { %533 = vmatprep.subr.mxu0 %v614_v3  ;;  %562 = vmatprep.subr.mxu1 %v614_v3  ;;  %p599_p3 = por %p598_p2, %p597_p1 }
  0x2a   :  { %534 = vmatpush3.msra.mxu0 %v262_v1  ;;  %559 = vmatprep.mubr.msk.f32.mxu0 %vm616_vm1, %v614_v3 }
  0x2b   :  { %535 = vmatprep.subr.mxu0 %v614_v3  ;;  %584 = vmatprep.mubr.msk.f32.mxu1 %vm616_vm1, %v614_v3  ;;  %p600_p4 = pnand %p599_p3, %p593_p0 }
  0x2c   :  { %536 = vmatpush3.msra.mxu0 %v261_v2  ;;  %563 = vmatpush3.msk.msra.mxu1 %vm369_vm2, %v357_v15 }
  0x2d   :  { %537 = vmatprep.subr.mxu0 %v614_v3  ;;  %564 = vmatprep.subr.mxu1 %v614_v3 }
  0x2e   :  { %538 = vmatpush3.msra.mxu0 %v260_v4  ;;  %565 = vmatpush3.msra.mxu1 %v356_v16 }
  0x2f   :  { %539 = vmatprep.subr.mxu0 %v614_v3  ;;  %566 = vmatprep.subr.mxu1 %v614_v3 }
  0x30   :  { %540 = vmatpush3.msra.mxu0 %v259_v5  ;;  %567 = vmatpush3.msra.mxu1 %v355_v17 }
  0x31   :  { %541 = vmatprep.subr.mxu0 %v614_v3  ;;  %568 = vmatprep.subr.mxu1 %v614_v3 }
  0x32   :  { %542 = vmatpush3.msra.mxu0 %v258_v6  ;;  %569 = vmatpush3.msra.mxu1 %v354_v18 }
  0x33   :  { %543 = vmatprep.subr.mxu0 %v614_v3  ;;  %570 = vmatprep.subr.mxu1 %v614_v3 }
  0x34   :  { %544 = vmatpush3.msra.mxu0 %v257_v7  ;;  %571 = vmatpush3.msra.mxu1 %v353_v19 }
  0x35   :  { %545 = vmatprep.subr.mxu0 %v614_v3  ;;  %572 = vmatprep.subr.mxu1 %v614_v3 }
  0x36   :  { %546 = vmatpush3.msra.mxu0 %v256_v8  ;;  %573 = vmatpush3.msra.mxu1 %v352_v20 }
  0x37   :  { %547 = vmatprep.subr.mxu0 %v614_v3  ;;  %574 = vmatprep.subr.mxu1 %v614_v3 }
  0x38   :  { %548 = vmatpush3.msra.mxu0 %v255_v9  ;;  %575 = vmatpush3.msra.mxu1 %v351_v21 }
  0x39   :  { %549 = vmatprep.subr.mxu0 %v614_v3  ;;  %576 = vmatprep.subr.mxu1 %v614_v3 }
  0x3a   :  { %550 = vmatpush3.msra.mxu0 %v254_v10  ;;  %577 = vmatpush3.msra.mxu1 %v350_v22 }
  0x3b   :  { %551 = vmatprep.subr.mxu0 %v614_v3  ;;  %578 = vmatprep.subr.mxu1 %v614_v3 }
  0x3c   :  { %552 = vmatpush3.msra.mxu0 %v253_v11  ;;  %579 = vmatpush3.msra.mxu1 %v349_v32 }
  0x3d   :  { %553 = vmatprep.subr.mxu0 %v614_v3  ;;  %580 = vmatprep.subr.mxu1 %v614_v3 }
  0x3e   :  { %554 = vmatpush3.msra.mxu0 %v252_v12  ;;  %581 = vmatpush3.msra.mxu1 %v348_v33 }
  0x3f   :  { %555 = vmatprep.subr.mxu0 %v614_v3  ;;  %582 = vmatprep.subr.mxu1 %v614_v3 }
  0x40   :  { %556 = vmatpush3.msra.mxu0 %v251_v13  ;;  %583 = vmatpush3.msra.mxu1 %v347_v34 }
  0x41   :  { %557 = vmatprep.subr.mxu0 %v614_v3 }
  0x42   :  { %558 = vmatpush3.msra.mxu0 %v250_v14 }
  0xe3   :  { %v498_v23 = vpop.f32.mrf.mxu0 }
  0xe5   :  { %v499_v24 = vpop.f32.mrf.mxu0 }
  0xe6   :  { %v500_v26 = vadd.f32 %v499_v24, %v498_v23 }
  0xe8   :  { %v176_v27 = vadd.f32 %v500_v26, %v459_v25  ;;  %v245_v28 = vpop.f32.mrf.mxu1 }
  0xea   :  { %v246_v29 = vadd.f32 %v245_v28, %v176_v27  ;;  %v247_v30 = vpop.f32.mrf.mxu1 }
  0xec   :  { %v249_v31 = vmax.f32 %v246_v29, 0.0 }
  0xee   :  { %560 = vmatmul.mubr.msk.f32.vlgmr.msra.gmra.mxu0 %vm272_vm3, %v249_v31 }
 0x1ae   :  { %v342_v36 = vpop.f32.mrf.mxu0 }
 0x1af   :  { %v343_v37 = vadd.f32 %v461_v35, %v342_v36 }
 0x1b0   :  { %v561_v38 = vpop.f32.mrf.mxu0 }
 0x1b1   :  { %v346_v39 = vmax.f32 %v343_v37, 0.0 }
 0x1b3   :  { %585 = vmatmul.mubr.msk.f32.vlgmr.msra.gmra.mxu1 %vm365_vm4, %v346_v39 }
 0x273   :  { %v439_v41 = vpop.f32.mrf.mxu1 }
 0x274   :  { %v440_v3 = vadd.f32 %v463_v40, %v439_v41 }
 0x275   :  { %v586_v42 = vpop.f32.mrf.mxu1 }
 0x276   :  { %444 = vst.msk [vmem:[#allocation2] sm:$0x3] %vm443_vm5, %v440_v3 }
 0x277   :  { %603 = shalt.err (!%p600_p4)
}
 0x278   :  { %454 = dma.vmem_to_hbm [thread:$0]  %s452_s15, 32, %s954_s7, [#allocation3]  }
 0x279   :  { %612 = dma.done.wait [#allocation3], 32  }
 0x27a   :  { %613 = vsyncadd [#allocation3], 4294967264 }
 0x27b   :  { %458 = vsyncpa [#allocation3], 1 }

</bundles_post_ra>
